<compile_context>
chip_gen: v5e
topology: v5e:2x2
jax: 0.10.0
libtpu: 0.0.40
codegen_flags: <defaults>
</compile_context>

<pallas_src>
import functools

import jax
import jax.numpy as jnp
from jax.experimental import pallas as pl
from jax.experimental.pallas import tpu as pltpu

NFEATURES = 2
TIME_EMB = 32
NBLOCKS = 2           # midblocks
NUNITS = 32
NBLK = NBLOCKS + 1    # 2 midblocks + outblocks_mean_cond_mlp
LN_EPS = 1e-5         # PyTorch nn.LayerNorm default


def _silu(v, approx):
    # SiLU = v * sigmoid(v).  exp goes to the EUP; with approx=True the
    # reciprocal also goes to the EUP (vrcp) instead of burning VALU slots.
    z = 1.0 + jnp.exp(-v)
    return v * (pl.reciprocal(z, approx=True) if approx else 1.0 / z)


def _layernorm_t(v, gamma, beta):
    """LayerNorm over the feature axis (axis 0) in (feature, batch) layout."""
    mu = jnp.mean(v, axis=0, keepdims=True)
    var = jnp.mean(v * v, axis=0, keepdims=True) - mu * mu   # single-pass variance
    var = jnp.maximum(var, 0.0)                              # cancellation guard
    return (v - mu) * jax.lax.rsqrt(var + LN_EPS) * gamma + beta


def mlp_kernel(inT_ref,       # (NFEATURES+1, tb): rows [0:NF)=x, row NF=timestep
               tcols_ref,     # (3, TIME_EMB, 1): wt1 | bt1 | bt2
               wt2_ref,       # (TIME_EMB, TIME_EMB)
               win_ref,       # (NUNITS, NFEATURES)
               incols_ref,    # (3, NUNITS, 1): bin | gin | bein
               wblkx_ref,     # (NBLK, NUNITS, NUNITS)        val-half of block weight
               wblkt_ref,     # (NBLK*NUNITS, TIME_EMB)       time-half, stacked
               blkcols_ref,   # (NBLK, 3, NUNITS, 1): bblk | gblk | beblk
               wout_ref,      # (NFEATURES, NUNITS)
               bout_ref,      # (NFEATURES, 1)
               oT_ref,        # (NFEATURES, tb)
               *, approx_silu, bf16_dots):
    f32 = jnp.float32
    op_dtype = jnp.bfloat16 if bf16_dots else f32

    def dot(a, b):  # MXU matmul, always f32 accumulation
        return jnp.dot(a.astype(op_dtype), b.astype(op_dtype),
                       preferred_element_type=f32)

    silu = lambda v: _silu(v, approx_silu)

    x = inT_ref[0:NFEATURES, :]                        # (2, tb)
    ts = inT_ref[NFEATURES:NFEATURES + 1, :]           # (1, tb)

    # ---- time_mlp: Linear(1->T) -> SiLU -> Linear(T->T) -> SiLU -------------
    tcols = tcols_ref[...]
    wt1, bt1, bt2 = tcols[0], tcols[1], tcols[2]       # (TIME_EMB, 1) each
    t = silu(wt1 * ts + bt1)                           # K=1 matmul as VPU outer FMA
    t = silu(dot(wt2_ref[...], t) + bt2)               # (TIME_EMB, tb)

    # ---- inblock: Linear(nfeatures->nunits) -> LayerNorm -> SiLU ------------
    win = win_ref[...]                                 # (NUNITS, 2)
    incols = incols_ref[...]
    bin_, gin, bein = incols[0], incols[1], incols[2]
    # K=2 matmul as two VPU broadcast FMAs (MXU would pad K to 128+ for nothing).
    val = win[:, 0:1] * x[0:1, :] + win[:, 1:2] * x[1:2, :] + bin_
    val = silu(_layernorm_t(val, gin, bein))

    # ---- conditioned blocks (2 midblocks + outblocks_mean_cond_mlp) ---------
    # Linear(concat([val, t])) split into its val half (per-block K=32 dot) and
    # its t half, which is loop-invariant and done once per tile as a single
    # stacked (NBLK*NUNITS, TIME_EMB) dot.  No concat scratch / VMEM round-trip.
    t_proj = dot(wblkt_ref[...], t)                    # (NBLK*NUNITS, tb)
    for i in range(NBLK):                              # static -> fully unrolled
        cols = blkcols_ref[i]                          # (3, NUNITS, 1)
        bblk, gblk, beblk = cols[0], cols[1], cols[2]
        h = dot(wblkx_ref[i], val) + t_proj[i * NUNITS:(i + 1) * NUNITS, :] + bblk
        h = silu(_layernorm_t(h, gblk, beblk))
        # dropout == identity in eval mode
        val = h + val                                  # skip_connection=True

    # ---- outblocks_mean_ff: Linear(nunits -> nfeatures) ---------------------
    out = dot(wout_ref[...], val) + bout_ref[...]
    oT_ref[...] = out.astype(oT_ref.dtype)             # lane-dense (2, tb) store


def _round_up(n, m):
    return (n + m - 1) // m * m


def _cdiv(n, m):
    return (n + m - 1) // m


@functools.partial(jax.jit, static_argnames=("tile_b", "approx_silu", "bf16_dots"))
def mlp_forward(x, timestep, p, *, tile_b=8192, approx_silu=True, bf16_dots=False):
    """x: (B, NFEATURES), timestep: (B, 1) -> (B, NFEATURES)."""
    B = x.shape[0]
    # Batch tile on lanes (multiple of 128).  Capped at ceil(B/2) so the grid
    # has >= 2 "parallel" steps whenever B allows it (v7x megacore uses both TCs).
    tb = max(128, min(_round_up(tile_b, 128), _round_up(_cdiv(B, 2), 128)))
    bp = _round_up(B, tb)
    pad = bp - B

    # Single streamed feature-major input: rows [0:NFEATURES) = x features,
    # row NFEATURES = timestep.  (Callers that already hold feature-major data
    # could skip this transpose entirely; concat+pad+cast+transpose fuse in XLA.)
    inT = jnp.pad(
        jnp.concatenate([x.astype(jnp.float32), timestep.astype(jnp.float32)],
                        axis=1),
        ((0, pad), (0, 0))).T                               # (NFEATURES+1, Bp)

    weights = (p["tcols"], p["wt2"], p["win"], p["incols"],
               p["wblkx"], p["wblkt"], p["blkcols"], p["wout"], p["bout"])

    batch_spec = lambda rows: pl.BlockSpec((rows, tb), lambda i: (0, i))
    # Full-array weight blocks with constant index_maps -> VMEM-resident.
    full_spec = lambda a: pl.BlockSpec(a.shape, lambda i, nd=a.ndim: (0,) * nd)

    kern = functools.partial(mlp_kernel, approx_silu=approx_silu,
                             bf16_dots=bf16_dots)
    outT = pl.pallas_call(
        kern,
        out_shape=jax.ShapeDtypeStruct((NFEATURES, bp), jnp.float32),
        grid=(bp // tb,),
        in_specs=[batch_spec(NFEATURES + 1)] + [full_spec(w) for w in weights],
        out_specs=batch_spec(NFEATURES),
        compiler_params=pltpu.CompilerParams(
            dimension_semantics=("parallel",),
            # Big batch tiles need more than v5e's 16 MiB scoped-VMEM default;
            # 48 MiB still fits comfortably under v7x's 64 MiB physical VMEM.
            vmem_limit_bytes=48 * 1024 * 1024),
    )(inT, *weights)
    return outT[:, :B].T


def init_params(key):
    """Deterministic PyTorch-style init, stored in the packed kernel layout:
    Linear weights as (out, in); bias/gamma/beta (out, 1) columns stacked along
    a leading axis; block weights split into val/time halves."""
    def linear(k, fan_in, fan_out):
        k1, k2 = jax.random.split(k)
        bound = 1.0 / float(fan_in) ** 0.5
        w = jax.random.uniform(k1, (fan_out, fan_in), jnp.float32, -bound, bound)
        b = jax.random.uniform(k2, (fan_out, 1), jnp.float32, -bound, bound)
        return w, b

    keys = jax.random.split(key, 8)
    wt1, bt1 = linear(keys[0], 1, TIME_EMB)
    wt2, bt2 = linear(keys[1], TIME_EMB, TIME_EMB)
    win, bin_ = linear(keys[2], NFEATURES, NUNITS)
    gin = jnp.ones((NUNITS, 1), jnp.float32)
    bein = jnp.zeros((NUNITS, 1), jnp.float32)

    blk_keys = jax.random.split(keys[3], NBLK)
    wx, wt_, bs = [], [], []
    for i in range(NBLK):
        # PyTorch layout (out, in) with in = NUNITS + TIME_EMB:
        # columns [0:NUNITS) multiply val, columns [NUNITS:) multiply t.
        w, b = linear(blk_keys[i], NUNITS + TIME_EMB, NUNITS)
        wx.append(w[:, :NUNITS])
        wt_.append(w[:, NUNITS:])
        bs.append(b)
    wblkx = jnp.stack(wx)                                  # (NBLK, NUNITS, NUNITS)
    wblkt = jnp.concatenate(wt_, axis=0)                   # (NBLK*NUNITS, TIME_EMB)
    bblk = jnp.stack(bs)                                   # (NBLK, NUNITS, 1)
    gblk = jnp.ones((NBLK, NUNITS, 1), jnp.float32)
    beblk = jnp.zeros((NBLK, NUNITS, 1), jnp.float32)

    wout, bout = linear(keys[4], NUNITS, NFEATURES)

    return dict(
        tcols=jnp.stack([wt1, bt1, bt2]),                  # (3, TIME_EMB, 1)
        wt2=wt2,
        win=win,
        incols=jnp.stack([bin_, gin, bein]),               # (3, NUNITS, 1)
        wblkx=wblkx,
        wblkt=wblkt,
        blkcols=jnp.stack([bblk, gblk, beblk], axis=1),    # (NBLK, 3, NUNITS, 1)
        wout=wout,
        bout=bout)


def _layernorm_ref(v, gamma, beta):
    mu = jnp.mean(v, axis=-1, keepdims=True)
    var = jnp.mean(jnp.square(v - mu), axis=-1, keepdims=True)
    return (v - mu) * jax.lax.rsqrt(var + LN_EPS) * gamma.T + beta.T


def mlp_reference(x, timestep, p):
    """Pure-JAX reference in the standard batch-major layout (exact SiLU, f32)."""
    silu = lambda v: v * jax.nn.sigmoid(v)
    lin = lambda v, w, b: v @ w.T + b.T
    wt1, bt1, bt2 = p["tcols"][0], p["tcols"][1], p["tcols"][2]
    t = silu(lin(timestep.astype(jnp.float32), wt1, bt1))
    t = silu(lin(t, p["wt2"], bt2))
    bin_, gin, bein = p["incols"][0], p["incols"][1], p["incols"][2]
    val = lin(x.astype(jnp.float32), p["win"], bin_)
    val = silu(_layernorm_ref(val, gin, bein))
    for i in range(NBLK):
        cat = jnp.concatenate([val, t], axis=1)
        w_full = jnp.concatenate(
            [p["wblkx"][i], p["wblkt"][i * NUNITS:(i + 1) * NUNITS]], axis=1)
        bblk, gblk, beblk = (p["blkcols"][i, 0], p["blkcols"][i, 1],
                             p["blkcols"][i, 2])
        h = silu(_layernorm_ref(lin(cat, w_full, bblk), gblk, beblk))
        val = h + val
    return lin(val, p["wout"], p["bout"])


if __name__ == "__main__":
    key = jax.random.PRNGKey(0)
    kx, kt, kp, kx2, kt2 = jax.random.split(key, 5)
    params = init_params(kp)

    # Small case (single tile; batch padded 8 -> 128 on the lane axis).
    B = 8
    x = jax.random.normal(kx, (B, NFEATURES), jnp.float32)
    timestep = jax.random.randint(kt, (B, 1), 0, 1000).astype(jnp.float32)
    ref = mlp_reference(x, timestep, params)

    # Exact-SiLU path: tight tolerance vs the f32 reference.
    out_exact = jax.block_until_ready(
        mlp_forward(x, timestep, params, approx_silu=False))
    assert out_exact.shape == (B, NFEATURES), out_exact.shape
    assert jnp.allclose(out_exact, ref, atol=1e-4, rtol=1e-4), (
        f"max abs err (exact) = {jnp.max(jnp.abs(out_exact - ref))}")

    # Default fast path (EUP approximate reciprocal in SiLU): looser tolerance.
    out = jax.block_until_ready(mlp_forward(x, timestep, params))
    assert out.shape == (B, NFEATURES), out.shape
    assert jnp.allclose(out, ref, atol=5e-2, rtol=5e-2), (
        f"max abs err (approx silu) = {jnp.max(jnp.abs(out - ref))}")

    # Multi-tile case: exercises the batch grid (3 steps) and edge padding.
    B2 = 300
    x2 = jax.random.normal(kx2, (B2, NFEATURES), jnp.float32)
    timestep2 = jax.random.randint(kt2, (B2, 1), 0, 1000).astype(jnp.float32)
    ref2 = mlp_reference(x2, timestep2, params)
    out2 = jax.block_until_ready(
        mlp_forward(x2, timestep2, params, tile_b=128, approx_silu=False))
    assert out2.shape == (B2, NFEATURES), out2.shape
    assert jnp.allclose(out2, ref2, atol=1e-4, rtol=1e-4), (
        f"max abs err (multi-tile) = {jnp.max(jnp.abs(out2 - ref2))}")

    # Optional bf16 MXU-operand path (v6e/v7x perf option): sanity check only —
    # bf16 operands trade a little accuracy for vld/vex relief, accum stays f32.
    out_bf16 = jax.block_until_ready(
        mlp_forward(x2, timestep2, params, bf16_dots=True))
    assert out_bf16.shape == (B2, NFEATURES), out_bf16.shape
    assert bool(jnp.all(jnp.isfinite(out_bf16)))
    assert float(jnp.max(jnp.abs(out_bf16 - ref2))) < 1.0

    print("KERNEL_OK")
</pallas_src>

<mosaic_0001>
module attributes {stable_mosaic.version = 11 : i64} {
  func.func @mlp_kernel(%arg0: i32, %arg1: memref<3x128xf32, #tpu.memory_space<vmem>>, %arg2: memref<3x32x1xf32, #tpu.memory_space<vmem>>, %arg3: memref<32x32xf32, #tpu.memory_space<vmem>>, %arg4: memref<32x2xf32, #tpu.memory_space<vmem>>, %arg5: memref<3x32x1xf32, #tpu.memory_space<vmem>>, %arg6: memref<3x32x32xf32, #tpu.memory_space<vmem>>, %arg7: memref<96x32xf32, #tpu.memory_space<vmem>>, %arg8: memref<3x3x32x1xf32, #tpu.memory_space<vmem>>, %arg9: memref<2x32xf32, #tpu.memory_space<vmem>>, %arg10: memref<2x1xf32, #tpu.memory_space<vmem>>, %arg11: memref<2x128xf32, #tpu.memory_space<vmem>>) attributes {dimension_semantics = [#tpu.dimension_semantics<parallel>], iteration_bounds = array<i64: 1>, scalar_prefetch = 0 : i64, scratch_operands = 0 : i64, tpu.core_type = #tpu.core_type<tc>, window_params = [{transform_indices = @transform_0, window_bounds = array<i64: 3, 128>}, {pipeline_mode = #tpu.pipeline_mode<synchronous>, transform_indices = @transform_1, window_bounds = array<i64: 3, 32, 1>}, {pipeline_mode = #tpu.pipeline_mode<synchronous>, transform_indices = @transform_2, window_bounds = array<i64: 32, 32>}, {pipeline_mode = #tpu.pipeline_mode<synchronous>, transform_indices = @transform_3, window_bounds = array<i64: 32, 2>}, {pipeline_mode = #tpu.pipeline_mode<synchronous>, transform_indices = @transform_4, window_bounds = array<i64: 3, 32, 1>}, {pipeline_mode = #tpu.pipeline_mode<synchronous>, transform_indices = @transform_5, window_bounds = array<i64: 3, 32, 32>}, {pipeline_mode = #tpu.pipeline_mode<synchronous>, transform_indices = @transform_6, window_bounds = array<i64: 96, 32>}, {pipeline_mode = #tpu.pipeline_mode<synchronous>, transform_indices = @transform_7, window_bounds = array<i64: 3, 3, 32, 1>}, {pipeline_mode = #tpu.pipeline_mode<synchronous>, transform_indices = @transform_8, window_bounds = array<i64: 2, 32>}, {pipeline_mode = #tpu.pipeline_mode<synchronous>, transform_indices = @transform_9, window_bounds = array<i64: 2, 1>}, {transform_indices = @transform_10, window_bounds = array<i64: 2, 128>}]} {
    %c0 = arith.constant 0 : index
    %c0_0 = arith.constant 0 : index
    %0 = vector.load %arg1[%c0, %c0_0] : memref<3x128xf32, #tpu.memory_space<vmem>>, vector<2x128xf32>
    %c2 = arith.constant 2 : index
    %c0_1 = arith.constant 0 : index
    %1 = vector.load %arg1[%c2, %c0_1] : memref<3x128xf32, #tpu.memory_space<vmem>>, vector<1x128xf32>
    %c0_2 = arith.constant 0 : index
    %c0_3 = arith.constant 0 : index
    %c0_4 = arith.constant 0 : index
    %2 = vector.load %arg2[%c0_2, %c0_3, %c0_4] : memref<3x32x1xf32, #tpu.memory_space<vmem>>, vector<3x32x1xf32>
    %3 = vector.extract_strided_slice %2 {offsets = [0, 0, 0], sizes = [1, 32, 1], strides = [1, 1, 1]} : vector<3x32x1xf32> to vector<1x32x1xf32>
    %4 = vector.shape_cast %3 : vector<1x32x1xf32> to vector<32x1xf32>
    %5 = vector.extract_strided_slice %2 {offsets = [1, 0, 0], sizes = [1, 32, 1], strides = [1, 1, 1]} : vector<3x32x1xf32> to vector<1x32x1xf32>
    %6 = vector.shape_cast %5 : vector<1x32x1xf32> to vector<32x1xf32>
    %7 = vector.extract_strided_slice %2 {offsets = [2, 0, 0], sizes = [1, 32, 1], strides = [1, 1, 1]} : vector<3x32x1xf32> to vector<1x32x1xf32>
    %8 = vector.shape_cast %7 : vector<1x32x1xf32> to vector<32x1xf32>
    %9 = vector.broadcast %4 : vector<32x1xf32> to vector<32x128xf32>
    %10 = vector.broadcast %1 : vector<1x128xf32> to vector<32x128xf32>
    %11 = arith.mulf %9, %10 : vector<32x128xf32>
    %12 = vector.broadcast %6 : vector<32x1xf32> to vector<32x128xf32>
    %13 = arith.addf %11, %12 : vector<32x128xf32>
    %cst = arith.constant 0.000000e+00 : f32
    %14 = vector.broadcast %cst : f32 to vector<32x128xf32>
    %15 = arith.subf %14, %13 : vector<32x128xf32>
    %16 = math.exp %15 : vector<32x128xf32>
    %cst_5 = arith.constant 1.000000e+00 : f32
    %17 = vector.broadcast %cst_5 : f32 to vector<32x128xf32>
    %18 = arith.addf %17, %16 : vector<32x128xf32>
    %cst_6 = arith.constant 1.000000e+00 : f32
    %19 = vector.broadcast %cst_6 : f32 to vector<32x128xf32>
    %20 = arith.divf %19, %18 : vector<32x128xf32>
    %21 = arith.mulf %13, %20 : vector<32x128xf32>
    %c0_7 = arith.constant 0 : index
    %c0_8 = arith.constant 0 : index
    %22 = vector.load %arg3[%c0_7, %c0_8] : memref<32x32xf32, #tpu.memory_space<vmem>>, vector<32x32xf32>
    %cst_9 = arith.constant dense<0.000000e+00> : vector<32x128xf32>
    %23 = tpu.matmul %22, %21, %cst_9 {dimension_numbers = #tpu.dot_dimension_numbers<[1], [0], [0], [1], [0, 0, 1, 1], [], []>} : vector<32x32xf32>, vector<32x128xf32>, vector<32x128xf32> -> vector<32x128xf32>
    %24 = vector.broadcast %8 : vector<32x1xf32> to vector<32x128xf32>
    %25 = arith.addf %23, %24 : vector<32x128xf32>
    %cst_10 = arith.constant 0.000000e+00 : f32
    %26 = vector.broadcast %cst_10 : f32 to vector<32x128xf32>
    %27 = arith.subf %26, %25 : vector<32x128xf32>
    %28 = math.exp %27 : vector<32x128xf32>
    %cst_11 = arith.constant 1.000000e+00 : f32
    %29 = vector.broadcast %cst_11 : f32 to vector<32x128xf32>
    %30 = arith.addf %29, %28 : vector<32x128xf32>
    %cst_12 = arith.constant 1.000000e+00 : f32
    %31 = vector.broadcast %cst_12 : f32 to vector<32x128xf32>
    %32 = arith.divf %31, %30 : vector<32x128xf32>
    %33 = arith.mulf %25, %32 : vector<32x128xf32>
    %c0_13 = arith.constant 0 : index
    %c0_14 = arith.constant 0 : index
    %34 = vector.load %arg4[%c0_13, %c0_14] : memref<32x2xf32, #tpu.memory_space<vmem>>, vector<32x2xf32>
    %c0_15 = arith.constant 0 : index
    %c0_16 = arith.constant 0 : index
    %c0_17 = arith.constant 0 : index
    %35 = vector.load %arg5[%c0_15, %c0_16, %c0_17] : memref<3x32x1xf32, #tpu.memory_space<vmem>>, vector<3x32x1xf32>
    %36 = vector.extract_strided_slice %35 {offsets = [0, 0, 0], sizes = [1, 32, 1], strides = [1, 1, 1]} : vector<3x32x1xf32> to vector<1x32x1xf32>
    %37 = vector.shape_cast %36 : vector<1x32x1xf32> to vector<32x1xf32>
    %38 = vector.extract_strided_slice %35 {offsets = [1, 0, 0], sizes = [1, 32, 1], strides = [1, 1, 1]} : vector<3x32x1xf32> to vector<1x32x1xf32>
    %39 = vector.shape_cast %38 : vector<1x32x1xf32> to vector<32x1xf32>
    %40 = vector.extract_strided_slice %35 {offsets = [2, 0, 0], sizes = [1, 32, 1], strides = [1, 1, 1]} : vector<3x32x1xf32> to vector<1x32x1xf32>
    %41 = vector.shape_cast %40 : vector<1x32x1xf32> to vector<32x1xf32>
    %42 = vector.extract_strided_slice %34 {offsets = [0, 0], sizes = [32, 1], strides = [1, 1]} : vector<32x2xf32> to vector<32x1xf32>
    %43 = vector.extract_strided_slice %0 {offsets = [0, 0], sizes = [1, 128], strides = [1, 1]} : vector<2x128xf32> to vector<1x128xf32>
    %44 = vector.broadcast %42 : vector<32x1xf32> to vector<32x128xf32>
    %45 = vector.broadcast %43 : vector<1x128xf32> to vector<32x128xf32>
    %46 = arith.mulf %44, %45 : vector<32x128xf32>
    %47 = vector.extract_strided_slice %34 {offsets = [0, 1], sizes = [32, 1], strides = [1, 1]} : vector<32x2xf32> to vector<32x1xf32>
    %48 = vector.extract_strided_slice %0 {offsets = [1, 0], sizes = [1, 128], strides = [1, 1]} : vector<2x128xf32> to vector<1x128xf32>
    %49 = vector.broadcast %47 : vector<32x1xf32> to vector<32x128xf32>
    %50 = vector.broadcast %48 : vector<1x128xf32> to vector<32x128xf32>
    %51 = arith.mulf %49, %50 : vector<32x128xf32>
    %52 = arith.addf %46, %51 : vector<32x128xf32>
    %53 = vector.broadcast %37 : vector<32x1xf32> to vector<32x128xf32>
    %54 = arith.addf %52, %53 : vector<32x128xf32>
    %cst_18 = arith.constant dense<0.000000e+00> : vector<128xf32>
    %55 = vector.multi_reduction <add>, %54, %cst_18 [0] : vector<32x128xf32> to vector<128xf32>
    %56 = vector.shape_cast %55 : vector<128xf32> to vector<1x128xf32>
    %cst_19 = arith.constant 3.200000e+01 : f32
    %57 = vector.broadcast %cst_19 : f32 to vector<1x128xf32>
    %58 = arith.divf %56, %57 : vector<1x128xf32>
    %59 = arith.mulf %54, %54 : vector<32x128xf32>
    %cst_20 = arith.constant dense<0.000000e+00> : vector<128xf32>
    %60 = vector.multi_reduction <add>, %59, %cst_20 [0] : vector<32x128xf32> to vector<128xf32>
    %61 = vector.shape_cast %60 : vector<128xf32> to vector<1x128xf32>
    %cst_21 = arith.constant 3.200000e+01 : f32
    %62 = vector.broadcast %cst_21 : f32 to vector<1x128xf32>
    %63 = arith.divf %61, %62 : vector<1x128xf32>
    %64 = arith.mulf %58, %58 : vector<1x128xf32>
    %65 = arith.subf %63, %64 : vector<1x128xf32>
    %cst_22 = arith.constant 0.000000e+00 : f32
    %66 = vector.broadcast %cst_22 : f32 to vector<1x128xf32>
    %67 = arith.maximumf %65, %66 : vector<1x128xf32>
    %68 = vector.broadcast %58 : vector<1x128xf32> to vector<32x128xf32>
    %69 = arith.subf %54, %68 : vector<32x128xf32>
    %cst_23 = arith.constant 9.99999974E-6 : f32
    %70 = vector.broadcast %cst_23 : f32 to vector<1x128xf32>
    %71 = arith.addf %67, %70 : vector<1x128xf32>
    %72 = math.rsqrt %71 : vector<1x128xf32>
    %73 = vector.broadcast %72 : vector<1x128xf32> to vector<32x128xf32>
    %74 = arith.mulf %69, %73 : vector<32x128xf32>
    %75 = vector.broadcast %39 : vector<32x1xf32> to vector<32x128xf32>
    %76 = arith.mulf %74, %75 : vector<32x128xf32>
    %77 = vector.broadcast %41 : vector<32x1xf32> to vector<32x128xf32>
    %78 = arith.addf %76, %77 : vector<32x128xf32>
    %cst_24 = arith.constant 0.000000e+00 : f32
    %79 = vector.broadcast %cst_24 : f32 to vector<32x128xf32>
    %80 = arith.subf %79, %78 : vector<32x128xf32>
    %81 = math.exp %80 : vector<32x128xf32>
    %cst_25 = arith.constant 1.000000e+00 : f32
    %82 = vector.broadcast %cst_25 : f32 to vector<32x128xf32>
    %83 = arith.addf %82, %81 : vector<32x128xf32>
    %cst_26 = arith.constant 1.000000e+00 : f32
    %84 = vector.broadcast %cst_26 : f32 to vector<32x128xf32>
    %85 = arith.divf %84, %83 : vector<32x128xf32>
    %86 = arith.mulf %78, %85 : vector<32x128xf32>
    %c0_27 = arith.constant 0 : index
    %c0_28 = arith.constant 0 : index
    %87 = vector.load %arg7[%c0_27, %c0_28] : memref<96x32xf32, #tpu.memory_space<vmem>>, vector<96x32xf32>
    %cst_29 = arith.constant dense<0.000000e+00> : vector<96x128xf32>
    %88 = tpu.matmul %87, %33, %cst_29 {dimension_numbers = #tpu.dot_dimension_numbers<[1], [0], [0], [1], [0, 0, 1, 1], [], []>} : vector<96x32xf32>, vector<32x128xf32>, vector<96x128xf32> -> vector<96x128xf32>
    %c0_30 = arith.constant 0 : index
    %c0_31 = arith.constant 0 : index
    %c0_32 = arith.constant 0 : index
    %c0_33 = arith.constant 0 : index
    %89 = vector.load %arg8[%c0_30, %c0_31, %c0_32, %c0_33] : memref<3x3x32x1xf32, #tpu.memory_space<vmem>>, vector<1x3x32x1xf32>
    %90 = vector.shape_cast %89 : vector<1x3x32x1xf32> to vector<3x32x1xf32>
    %91 = vector.extract_strided_slice %90 {offsets = [0, 0, 0], sizes = [1, 32, 1], strides = [1, 1, 1]} : vector<3x32x1xf32> to vector<1x32x1xf32>
    %92 = vector.shape_cast %91 : vector<1x32x1xf32> to vector<32x1xf32>
    %93 = vector.extract_strided_slice %90 {offsets = [1, 0, 0], sizes = [1, 32, 1], strides = [1, 1, 1]} : vector<3x32x1xf32> to vector<1x32x1xf32>
    %94 = vector.shape_cast %93 : vector<1x32x1xf32> to vector<32x1xf32>
    %95 = vector.extract_strided_slice %90 {offsets = [2, 0, 0], sizes = [1, 32, 1], strides = [1, 1, 1]} : vector<3x32x1xf32> to vector<1x32x1xf32>
    %96 = vector.shape_cast %95 : vector<1x32x1xf32> to vector<32x1xf32>
    %c0_34 = arith.constant 0 : index
    %c0_35 = arith.constant 0 : index
    %c0_36 = arith.constant 0 : index
    %97 = vector.load %arg6[%c0_34, %c0_35, %c0_36] : memref<3x32x32xf32, #tpu.memory_space<vmem>>, vector<1x32x32xf32>
    %98 = vector.shape_cast %97 : vector<1x32x32xf32> to vector<32x32xf32>
    %cst_37 = arith.constant dense<0.000000e+00> : vector<32x128xf32>
    %99 = tpu.matmul %98, %86, %cst_37 {dimension_numbers = #tpu.dot_dimension_numbers<[1], [0], [0], [1], [0, 0, 1, 1], [], []>} : vector<32x32xf32>, vector<32x128xf32>, vector<32x128xf32> -> vector<32x128xf32>
    %100 = vector.extract_strided_slice %88 {offsets = [0, 0], sizes = [32, 128], strides = [1, 1]} : vector<96x128xf32> to vector<32x128xf32>
    %101 = arith.addf %99, %100 : vector<32x128xf32>
    %102 = vector.broadcast %92 : vector<32x1xf32> to vector<32x128xf32>
    %103 = arith.addf %101, %102 : vector<32x128xf32>
    %cst_38 = arith.constant dense<0.000000e+00> : vector<128xf32>
    %104 = vector.multi_reduction <add>, %103, %cst_38 [0] : vector<32x128xf32> to vector<128xf32>
    %105 = vector.shape_cast %104 : vector<128xf32> to vector<1x128xf32>
    %cst_39 = arith.constant 3.200000e+01 : f32
    %106 = vector.broadcast %cst_39 : f32 to vector<1x128xf32>
    %107 = arith.divf %105, %106 : vector<1x128xf32>
    %108 = arith.mulf %103, %103 : vector<32x128xf32>
    %cst_40 = arith.constant dense<0.000000e+00> : vector<128xf32>
    %109 = vector.multi_reduction <add>, %108, %cst_40 [0] : vector<32x128xf32> to vector<128xf32>
    %110 = vector.shape_cast %109 : vector<128xf32> to vector<1x128xf32>
    %cst_41 = arith.constant 3.200000e+01 : f32
    %111 = vector.broadcast %cst_41 : f32 to vector<1x128xf32>
    %112 = arith.divf %110, %111 : vector<1x128xf32>
    %113 = arith.mulf %107, %107 : vector<1x128xf32>
    %114 = arith.subf %112, %113 : vector<1x128xf32>
    %cst_42 = arith.constant 0.000000e+00 : f32
    %115 = vector.broadcast %cst_42 : f32 to vector<1x128xf32>
    %116 = arith.maximumf %114, %115 : vector<1x128xf32>
    %117 = vector.broadcast %107 : vector<1x128xf32> to vector<32x128xf32>
    %118 = arith.subf %103, %117 : vector<32x128xf32>
    %cst_43 = arith.constant 9.99999974E-6 : f32
    %119 = vector.broadcast %cst_43 : f32 to vector<1x128xf32>
    %120 = arith.addf %116, %119 : vector<1x128xf32>
    %121 = math.rsqrt %120 : vector<1x128xf32>
    %122 = vector.broadcast %121 : vector<1x128xf32> to vector<32x128xf32>
    %123 = arith.mulf %118, %122 : vector<32x128xf32>
    %124 = vector.broadcast %94 : vector<32x1xf32> to vector<32x128xf32>
    %125 = arith.mulf %123, %124 : vector<32x128xf32>
    %126 = vector.broadcast %96 : vector<32x1xf32> to vector<32x128xf32>
    %127 = arith.addf %125, %126 : vector<32x128xf32>
    %cst_44 = arith.constant 0.000000e+00 : f32
    %128 = vector.broadcast %cst_44 : f32 to vector<32x128xf32>
    %129 = arith.subf %128, %127 : vector<32x128xf32>
    %130 = math.exp %129 : vector<32x128xf32>
    %cst_45 = arith.constant 1.000000e+00 : f32
    %131 = vector.broadcast %cst_45 : f32 to vector<32x128xf32>
    %132 = arith.addf %131, %130 : vector<32x128xf32>
    %cst_46 = arith.constant 1.000000e+00 : f32
    %133 = vector.broadcast %cst_46 : f32 to vector<32x128xf32>
    %134 = arith.divf %133, %132 : vector<32x128xf32>
    %135 = arith.mulf %127, %134 : vector<32x128xf32>
    %136 = arith.addf %135, %86 : vector<32x128xf32>
    %c1 = arith.constant 1 : index
    %c0_47 = arith.constant 0 : index
    %c0_48 = arith.constant 0 : index
    %c0_49 = arith.constant 0 : index
    %137 = vector.load %arg8[%c1, %c0_47, %c0_48, %c0_49] : memref<3x3x32x1xf32, #tpu.memory_space<vmem>>, vector<1x3x32x1xf32>
    %138 = vector.shape_cast %137 : vector<1x3x32x1xf32> to vector<3x32x1xf32>
    %139 = vector.extract_strided_slice %138 {offsets = [0, 0, 0], sizes = [1, 32, 1], strides = [1, 1, 1]} : vector<3x32x1xf32> to vector<1x32x1xf32>
    %140 = vector.shape_cast %139 : vector<1x32x1xf32> to vector<32x1xf32>
    %141 = vector.extract_strided_slice %138 {offsets = [1, 0, 0], sizes = [1, 32, 1], strides = [1, 1, 1]} : vector<3x32x1xf32> to vector<1x32x1xf32>
    %142 = vector.shape_cast %141 : vector<1x32x1xf32> to vector<32x1xf32>
    %143 = vector.extract_strided_slice %138 {offsets = [2, 0, 0], sizes = [1, 32, 1], strides = [1, 1, 1]} : vector<3x32x1xf32> to vector<1x32x1xf32>
    %144 = vector.shape_cast %143 : vector<1x32x1xf32> to vector<32x1xf32>
    %c1_50 = arith.constant 1 : index
    %c0_51 = arith.constant 0 : index
    %c0_52 = arith.constant 0 : index
    %145 = vector.load %arg6[%c1_50, %c0_51, %c0_52] : memref<3x32x32xf32, #tpu.memory_space<vmem>>, vector<1x32x32xf32>
    %146 = vector.shape_cast %145 : vector<1x32x32xf32> to vector<32x32xf32>
    %cst_53 = arith.constant dense<0.000000e+00> : vector<32x128xf32>
    %147 = tpu.matmul %146, %136, %cst_53 {dimension_numbers = #tpu.dot_dimension_numbers<[1], [0], [0], [1], [0, 0, 1, 1], [], []>} : vector<32x32xf32>, vector<32x128xf32>, vector<32x128xf32> -> vector<32x128xf32>
    %148 = vector.extract_strided_slice %88 {offsets = [32, 0], sizes = [32, 128], strides = [1, 1]} : vector<96x128xf32> to vector<32x128xf32>
    %149 = arith.addf %147, %148 : vector<32x128xf32>
    %150 = vector.broadcast %140 : vector<32x1xf32> to vector<32x128xf32>
    %151 = arith.addf %149, %150 : vector<32x128xf32>
    %cst_54 = arith.constant dense<0.000000e+00> : vector<128xf32>
    %152 = vector.multi_reduction <add>, %151, %cst_54 [0] : vector<32x128xf32> to vector<128xf32>
    %153 = vector.shape_cast %152 : vector<128xf32> to vector<1x128xf32>
    %cst_55 = arith.constant 3.200000e+01 : f32
    %154 = vector.broadcast %cst_55 : f32 to vector<1x128xf32>
    %155 = arith.divf %153, %154 : vector<1x128xf32>
    %156 = arith.mulf %151, %151 : vector<32x128xf32>
    %cst_56 = arith.constant dense<0.000000e+00> : vector<128xf32>
    %157 = vector.multi_reduction <add>, %156, %cst_56 [0] : vector<32x128xf32> to vector<128xf32>
    %158 = vector.shape_cast %157 : vector<128xf32> to vector<1x128xf32>
    %cst_57 = arith.constant 3.200000e+01 : f32
    %159 = vector.broadcast %cst_57 : f32 to vector<1x128xf32>
    %160 = arith.divf %158, %159 : vector<1x128xf32>
    %161 = arith.mulf %155, %155 : vector<1x128xf32>
    %162 = arith.subf %160, %161 : vector<1x128xf32>
    %cst_58 = arith.constant 0.000000e+00 : f32
    %163 = vector.broadcast %cst_58 : f32 to vector<1x128xf32>
    %164 = arith.maximumf %162, %163 : vector<1x128xf32>
    %165 = vector.broadcast %155 : vector<1x128xf32> to vector<32x128xf32>
    %166 = arith.subf %151, %165 : vector<32x128xf32>
    %cst_59 = arith.constant 9.99999974E-6 : f32
    %167 = vector.broadcast %cst_59 : f32 to vector<1x128xf32>
    %168 = arith.addf %164, %167 : vector<1x128xf32>
    %169 = math.rsqrt %168 : vector<1x128xf32>
    %170 = vector.broadcast %169 : vector<1x128xf32> to vector<32x128xf32>
    %171 = arith.mulf %166, %170 : vector<32x128xf32>
    %172 = vector.broadcast %142 : vector<32x1xf32> to vector<32x128xf32>
    %173 = arith.mulf %171, %172 : vector<32x128xf32>
    %174 = vector.broadcast %144 : vector<32x1xf32> to vector<32x128xf32>
    %175 = arith.addf %173, %174 : vector<32x128xf32>
    %cst_60 = arith.constant 0.000000e+00 : f32
    %176 = vector.broadcast %cst_60 : f32 to vector<32x128xf32>
    %177 = arith.subf %176, %175 : vector<32x128xf32>
    %178 = math.exp %177 : vector<32x128xf32>
    %cst_61 = arith.constant 1.000000e+00 : f32
    %179 = vector.broadcast %cst_61 : f32 to vector<32x128xf32>
    %180 = arith.addf %179, %178 : vector<32x128xf32>
    %cst_62 = arith.constant 1.000000e+00 : f32
    %181 = vector.broadcast %cst_62 : f32 to vector<32x128xf32>
    %182 = arith.divf %181, %180 : vector<32x128xf32>
    %183 = arith.mulf %175, %182 : vector<32x128xf32>
    %184 = arith.addf %183, %136 : vector<32x128xf32>
    %c2_63 = arith.constant 2 : index
    %c0_64 = arith.constant 0 : index
    %c0_65 = arith.constant 0 : index
    %c0_66 = arith.constant 0 : index
    %185 = vector.load %arg8[%c2_63, %c0_64, %c0_65, %c0_66] : memref<3x3x32x1xf32, #tpu.memory_space<vmem>>, vector<1x3x32x1xf32>
    %186 = vector.shape_cast %185 : vector<1x3x32x1xf32> to vector<3x32x1xf32>
    %187 = vector.extract_strided_slice %186 {offsets = [0, 0, 0], sizes = [1, 32, 1], strides = [1, 1, 1]} : vector<3x32x1xf32> to vector<1x32x1xf32>
    %188 = vector.shape_cast %187 : vector<1x32x1xf32> to vector<32x1xf32>
    %189 = vector.extract_strided_slice %186 {offsets = [1, 0, 0], sizes = [1, 32, 1], strides = [1, 1, 1]} : vector<3x32x1xf32> to vector<1x32x1xf32>
    %190 = vector.shape_cast %189 : vector<1x32x1xf32> to vector<32x1xf32>
    %191 = vector.extract_strided_slice %186 {offsets = [2, 0, 0], sizes = [1, 32, 1], strides = [1, 1, 1]} : vector<3x32x1xf32> to vector<1x32x1xf32>
    %192 = vector.shape_cast %191 : vector<1x32x1xf32> to vector<32x1xf32>
    %c2_67 = arith.constant 2 : index
    %c0_68 = arith.constant 0 : index
    %c0_69 = arith.constant 0 : index
    %193 = vector.load %arg6[%c2_67, %c0_68, %c0_69] : memref<3x32x32xf32, #tpu.memory_space<vmem>>, vector<1x32x32xf32>
    %194 = vector.shape_cast %193 : vector<1x32x32xf32> to vector<32x32xf32>
    %cst_70 = arith.constant dense<0.000000e+00> : vector<32x128xf32>
    %195 = tpu.matmul %194, %184, %cst_70 {dimension_numbers = #tpu.dot_dimension_numbers<[1], [0], [0], [1], [0, 0, 1, 1], [], []>} : vector<32x32xf32>, vector<32x128xf32>, vector<32x128xf32> -> vector<32x128xf32>
    %196 = vector.extract_strided_slice %88 {offsets = [64, 0], sizes = [32, 128], strides = [1, 1]} : vector<96x128xf32> to vector<32x128xf32>
    %197 = arith.addf %195, %196 : vector<32x128xf32>
    %198 = vector.broadcast %188 : vector<32x1xf32> to vector<32x128xf32>
    %199 = arith.addf %197, %198 : vector<32x128xf32>
    %cst_71 = arith.constant dense<0.000000e+00> : vector<128xf32>
    %200 = vector.multi_reduction <add>, %199, %cst_71 [0] : vector<32x128xf32> to vector<128xf32>
    %201 = vector.shape_cast %200 : vector<128xf32> to vector<1x128xf32>
    %cst_72 = arith.constant 3.200000e+01 : f32
    %202 = vector.broadcast %cst_72 : f32 to vector<1x128xf32>
    %203 = arith.divf %201, %202 : vector<1x128xf32>
    %204 = arith.mulf %199, %199 : vector<32x128xf32>
    %cst_73 = arith.constant dense<0.000000e+00> : vector<128xf32>
    %205 = vector.multi_reduction <add>, %204, %cst_73 [0] : vector<32x128xf32> to vector<128xf32>
    %206 = vector.shape_cast %205 : vector<128xf32> to vector<1x128xf32>
    %cst_74 = arith.constant 3.200000e+01 : f32
    %207 = vector.broadcast %cst_74 : f32 to vector<1x128xf32>
    %208 = arith.divf %206, %207 : vector<1x128xf32>
    %209 = arith.mulf %203, %203 : vector<1x128xf32>
    %210 = arith.subf %208, %209 : vector<1x128xf32>
    %cst_75 = arith.constant 0.000000e+00 : f32
    %211 = vector.broadcast %cst_75 : f32 to vector<1x128xf32>
    %212 = arith.maximumf %210, %211 : vector<1x128xf32>
    %213 = vector.broadcast %203 : vector<1x128xf32> to vector<32x128xf32>
    %214 = arith.subf %199, %213 : vector<32x128xf32>
    %cst_76 = arith.constant 9.99999974E-6 : f32
    %215 = vector.broadcast %cst_76 : f32 to vector<1x128xf32>
    %216 = arith.addf %212, %215 : vector<1x128xf32>
    %217 = math.rsqrt %216 : vector<1x128xf32>
    %218 = vector.broadcast %217 : vector<1x128xf32> to vector<32x128xf32>
    %219 = arith.mulf %214, %218 : vector<32x128xf32>
    %220 = vector.broadcast %190 : vector<32x1xf32> to vector<32x128xf32>
    %221 = arith.mulf %219, %220 : vector<32x128xf32>
    %222 = vector.broadcast %192 : vector<32x1xf32> to vector<32x128xf32>
    %223 = arith.addf %221, %222 : vector<32x128xf32>
    %cst_77 = arith.constant 0.000000e+00 : f32
    %224 = vector.broadcast %cst_77 : f32 to vector<32x128xf32>
    %225 = arith.subf %224, %223 : vector<32x128xf32>
    %226 = math.exp %225 : vector<32x128xf32>
    %cst_78 = arith.constant 1.000000e+00 : f32
    %227 = vector.broadcast %cst_78 : f32 to vector<32x128xf32>
    %228 = arith.addf %227, %226 : vector<32x128xf32>
    %cst_79 = arith.constant 1.000000e+00 : f32
    %229 = vector.broadcast %cst_79 : f32 to vector<32x128xf32>
    %230 = arith.divf %229, %228 : vector<32x128xf32>
    %231 = arith.mulf %223, %230 : vector<32x128xf32>
    %232 = arith.addf %231, %184 : vector<32x128xf32>
    %c0_80 = arith.constant 0 : index
    %c0_81 = arith.constant 0 : index
    %233 = vector.load %arg9[%c0_80, %c0_81] : memref<2x32xf32, #tpu.memory_space<vmem>>, vector<2x32xf32>
    %cst_82 = arith.constant dense<0.000000e+00> : vector<2x128xf32>
    %234 = tpu.matmul %233, %232, %cst_82 {dimension_numbers = #tpu.dot_dimension_numbers<[1], [0], [0], [1], [0, 0, 1, 1], [], []>} : vector<2x32xf32>, vector<32x128xf32>, vector<2x128xf32> -> vector<2x128xf32>
    %c0_83 = arith.constant 0 : index
    %c0_84 = arith.constant 0 : index
    %235 = vector.load %arg10[%c0_83, %c0_84] : memref<2x1xf32, #tpu.memory_space<vmem>>, vector<2x1xf32>
    %236 = vector.broadcast %235 : vector<2x1xf32> to vector<2x128xf32>
    %237 = arith.addf %234, %236 : vector<2x128xf32>
    %c0_85 = arith.constant 0 : index
    %c0_86 = arith.constant 0 : index
    %238 = vector.load %arg11[%c0_85, %c0_86] : memref<2x128xf32, #tpu.memory_space<vmem>>, vector<2x128xf32>
    tpu.vector_store %arg11[%c0_85, %c0_86], %237 {strides = array<i32>} : memref<2x128xf32, #tpu.memory_space<vmem>>, vector<2x128xf32>,
    return
  }
  func.func @transform_0(%arg0: i32) -> (i32, i32) {
    %c0_i32 = arith.constant 0 : i32
    %c0_i32_0 = arith.constant 0 : i32
    return %c0_i32, %arg0 : i32, i32
  }
  func.func @transform_1(%arg0: i32) -> (i32, i32, i32) {
    %c0_i32 = arith.constant 0 : i32
    %c0_i32_0 = arith.constant 0 : i32
    %c0_i32_1 = arith.constant 0 : i32
    %c0_i32_2 = arith.constant 0 : i32
    return %c0_i32, %c0_i32_0, %c0_i32_1 : i32, i32, i32
  }
  func.func @transform_2(%arg0: i32) -> (i32, i32) {
    %c0_i32 = arith.constant 0 : i32
    %c0_i32_0 = arith.constant 0 : i32
    %c0_i32_1 = arith.constant 0 : i32
    return %c0_i32, %c0_i32_0 : i32, i32
  }
  func.func @transform_3(%arg0: i32) -> (i32, i32) {
    %c0_i32 = arith.constant 0 : i32
    %c0_i32_0 = arith.constant 0 : i32
    %c0_i32_1 = arith.constant 0 : i32
    return %c0_i32, %c0_i32_0 : i32, i32
  }
  func.func @transform_4(%arg0: i32) -> (i32, i32, i32) {
    %c0_i32 = arith.constant 0 : i32
    %c0_i32_0 = arith.constant 0 : i32
    %c0_i32_1 = arith.constant 0 : i32
    %c0_i32_2 = arith.constant 0 : i32
    return %c0_i32, %c0_i32_0, %c0_i32_1 : i32, i32, i32
  }
  func.func @transform_5(%arg0: i32) -> (i32, i32, i32) {
    %c0_i32 = arith.constant 0 : i32
    %c0_i32_0 = arith.constant 0 : i32
    %c0_i32_1 = arith.constant 0 : i32
    %c0_i32_2 = arith.constant 0 : i32
    return %c0_i32, %c0_i32_0, %c0_i32_1 : i32, i32, i32
  }
  func.func @transform_6(%arg0: i32) -> (i32, i32) {
    %c0_i32 = arith.constant 0 : i32
    %c0_i32_0 = arith.constant 0 : i32
    %c0_i32_1 = arith.constant 0 : i32
    return %c0_i32, %c0_i32_0 : i32, i32
  }
  func.func @transform_7(%arg0: i32) -> (i32, i32, i32, i32) {
    %c0_i32 = arith.constant 0 : i32
    %c0_i32_0 = arith.constant 0 : i32
    %c0_i32_1 = arith.constant 0 : i32
    %c0_i32_2 = arith.constant 0 : i32
    %c0_i32_3 = arith.constant 0 : i32
    return %c0_i32, %c0_i32_0, %c0_i32_1, %c0_i32_2 : i32, i32, i32, i32
  }
  func.func @transform_8(%arg0: i32) -> (i32, i32) {
    %c0_i32 = arith.constant 0 : i32
    %c0_i32_0 = arith.constant 0 : i32
    %c0_i32_1 = arith.constant 0 : i32
    return %c0_i32, %c0_i32_0 : i32, i32
  }
  func.func @transform_9(%arg0: i32) -> (i32, i32) {
    %c0_i32 = arith.constant 0 : i32
    %c0_i32_0 = arith.constant 0 : i32
    %c0_i32_1 = arith.constant 0 : i32
    return %c0_i32, %c0_i32_0 : i32, i32
  }
  func.func @transform_10(%arg0: i32) -> (i32, i32) {
    %c0_i32 = arith.constant 0 : i32
    %c0_i32_0 = arith.constant 0 : i32
    return %c0_i32, %arg0 : i32, i32
  }
}

</mosaic_0001>

<bundles_post_ra>
// kernel: mlp_forward.1
= control target key start
LH: loop header
LB: loop body
LE: loop exit
PB: predicated region body
PF: predicated region fallthrough
CT: control target
= control target key end

     0   :  { %v1696_v0 = vmov 0   ;;  %v1697_v11 = vmov 1   ;;  %s2434_s1 = inlined_call_operand.vmem [shape: f32[3,32,1], index: 1, kind: input, shape index: {}]   ;;  %s2435_s0 = inlined_call_operand.vmem [shape: f32[3,128], index: 0, kind: input, shape index: {}]   ;;  %s2436_s3 = inlined_call_operand.vmem [shape: f32[32,2], index: 3, kind: input, shape index: {}]   ;;  %s2437_s4 = inlined_call_operand.vmem [shape: f32[3,32,1], index: 4, kind: input, shape index: {}]   ;;  %s2438_s7 = inlined_call_operand.vmem [shape: f32[3,3,32,1], index: 7, kind: input, shape index: {}]   ;;  %s2439_s2 = inlined_call_operand.vmem [shape: f32[32,32], index: 2, kind: input, shape index: {}]   ;;  %s2440_s9 = inlined_call_operand.vmem [shape: f32[2,1], index: 9, kind: input, shape index: {}]   ;;  %s2441_s5 = inlined_call_operand.vmem [shape: f32[3,32,32], index: 5, kind: input, shape index: {}]   ;;  %s2442_s6 = inlined_call_operand.vmem [shape: f32[96,32], index: 6, kind: input, shape index: {}]   ;;  %s2443_s8 = inlined_call_operand.vmem [shape: f32[2,32], index: 8, kind: input, shape index: {}]   ;;  %s2444_s10 = inlined_call_operand.vmem [shape: f32[2,128], index: 10, kind: output, shape index: {}]  }
   0x1   :  { %1582 = vset.pattern.permute.xlu2 %v1696_v0  ;;  %1581 = vset.pattern.permute.xlu1 %v1696_v0  ;;  %v44_v1 = vld [vmem:[%s2434_s1 + $0x38] sm:$0xff]  ;;  %v43_v2 = vld [vmem:[%s2434_s1 + $0x30] sm:$0xff]  ;;  %v38_v4 = vld [vmem:[%s2434_s1 + $0x8] sm:$0xff] }
   0x2   :  { %v40_v3 = vld [vmem:[%s2434_s1 + $0x18] sm:$0xff]  ;;  %1580 = vset.pattern.permute.xlu0 %v1696_v0  ;;  %91 = vperm.xlu1 %1581, %v44_v1   ;;  %v39_v5 = vld [vmem:[%s2434_s1 + $0x10] sm:$0xff]  ;;  %v37_v6 = vld [vmem:[%s2434_s1] sm:$0xff] }
   0x3   :  { %86 = vperm.xlu2 %1582, %v43_v2   ;;  %66 = vperm.xlu0 %1580, %v40_v3   ;;  %v41_v7 = vld [vmem:[%s2434_s1 + $0x20] sm:$0xff]  ;;  %v42_v8 = vld [vmem:[%s2434_s1 + $0x28] sm:$0xff]  ;;  %v326_v12 = vld [vmem:[%s2436_s3 + $0x10] sm:$0xff] }
   0x4   :  { %v324_v9 = vld [vmem:[%s2436_s3] sm:$0xff]  ;;  %v325_v10 = vld [vmem:[%s2436_s3 + $0x8] sm:$0xff]  ;;  %v327_v13 = vld [vmem:[%s2436_s3 + $0x18] sm:$0xff] }
   0x5   :  { %v328_v14 = vld [vmem:[%s2437_s4] sm:$0xff]  ;;  %v329_v15 = vld [vmem:[%s2437_s4 + $0x8] sm:$0xff]  ;;  %v330_v16 = vld [vmem:[%s2437_s4 + $0x10] sm:$0xff] }
   0x6   :  { %v331_v17 = vld [vmem:[%s2437_s4 + $0x18] sm:$0xff]  ;;  %v334_v19 = vld [vmem:[%s2437_s4 + $0x30] sm:$0xff]  ;;  %v332_v21 = vld [vmem:[%s2437_s4 + $0x20] sm:$0xff] }
   0x7   :  { %v335_v18 = vld [vmem:[%s2437_s4 + $0x38] sm:$0xff]  ;;  %v333_v22 = vld [vmem:[%s2437_s4 + $0x28] sm:$0xff]  ;;  %v338_v23 = vld [vmem:[%s2437_s4 + $0x50] sm:$0xff] }
   0x8   :  { %v339_v20 = vld [vmem:[%s2437_s4 + $0x58] sm:$0xff]  ;;  %v336_v24 = vld [vmem:[%s2437_s4 + $0x40] sm:$0xff]  ;;  %v337_v25 = vld [vmem:[%s2437_s4 + $0x48] sm:$0xff] }
   0x9   :  { %v48_v26 = vld [vmem:[%s2434_s1 + $0x58] sm:$0xff]  ;;  %v45_v27 = vld [vmem:[%s2434_s1 + $0x40] sm:$0xff]  ;;  %v47_v28 = vld [vmem:[%s2434_s1 + $0x50] sm:$0xff] }
   0xa   :  { %56 = vperm.xlu1 %1581, %v38_v4   ;;  %v46_v29 = vld [vmem:[%s2434_s1 + $0x48] sm:$0xff]  ;;  %v698_v30 = vld [vmem:[%s2438_s7 + $0x10] sm:$0xff]  ;;  %v696_v31 = vld [vmem:[%s2438_s7] sm:$0xff] }
   0xb   :  { %61 = vperm.xlu0 %1580, %v39_v5   ;;  %51 = vperm.xlu2 %1582, %v37_v6   ;;  %v697_v32 = vld [vmem:[%s2438_s7 + $0x8] sm:$0xff]  ;;  %v702_v33 = vld [vmem:[%s2438_s7 + $0x30] sm:$0xff]  ;;  %v699_v34 = vld [vmem:[%s2438_s7 + $0x18] sm:$0xff] }
   0xc   :  { %v703_v35 = vld [vmem:[%s2438_s7 + $0x38] sm:$0xff]  ;;  %v706_v36 = vld [vmem:[%s2438_s7 + $0x50] sm:$0xff]  ;;  %v701_v39 = vld [vmem:[%s2438_s7 + $0x28] sm:$0xff] }
   0xd   :  { %v707_v38 = vld [vmem:[%s2438_s7 + $0x58] sm:$0xff]  ;;  %v704_v40 = vld [vmem:[%s2438_s7 + $0x40] sm:$0xff]  ;;  %v705_v43 = vld [vmem:[%s2438_s7 + $0x48] sm:$0xff] }
   0xe   :  { %v1589_v41 = vld [vmem:[%s2435_s0 + $0x2] ss:$0 sm:$0xff]  ;;  %v1534_v45 = vld [vmem:[%s2438_s7 + $0x70] sm:$0xff]  ;;  %v1533_v51 = vld [vmem:[%s2438_s7 + $0x68] sm:$0xff] }
   0xf   :  { %v700_v42 = vld [vmem:[%s2438_s7 + $0x20] sm:$0xff]  ;;  %v1538_v53 = vld [vmem:[%s2438_s7 + $0x90] sm:$0xff]  ;;  %v1535_v61 = vld [vmem:[%s2438_s7 + $0x78] sm:$0xff] }
  0x10   :  { %v1532_v50 = vld [vmem:[%s2438_s7 + $0x60] sm:$0xff]  ;;  %v1539_v62 = vld [vmem:[%s2438_s7 + $0x98] sm:$0xff] }
  0x12   :  { %76 = vperm.xlu1 %1581, %v41_v7  }
  0x13   :  { %81 = vperm.xlu0 %1580, %v42_v8   ;;  %342 = vperm.xlu2 %1582, %v324_v9  }
  0x1a   :  { %1583 = vset.pattern.permute.xlu1 %v1697_v11 }
  0x1b   :  { %347 = vperm.xlu0 %1580, %v325_v10   ;;  %1584 = vset.pattern.permute.xlu2 %v1697_v11 }
  0x1c   :  { %366 = vperm.xlu1 %1583, %v324_v9   ;;  %370 = vperm.xlu2 %1584, %v325_v10  }
  0x23   :  { %352 = vperm.xlu0 %1580, %v326_v12  }
  0x24   :  { %374 = vperm.xlu1 %1583, %v326_v12   ;;  %1585 = vset.pattern.permute.xlu2 %v1696_v0 }
  0x25   :  { %357 = vperm.xlu2 %1585, %v327_v13  }
  0x2b   :  { %1586 = vset.pattern.permute.xlu0 %v1697_v11 }
  0x2c   :  { %1587 = vset.pattern.permute.xlu1 %v1696_v0  ;;  %378 = vperm.xlu0 %1586, %v327_v13  }
  0x2d   :  { %392 = vperm.xlu1 %1587, %v328_v14   ;;  %397 = vperm.xlu2 %1585, %v329_v15   ;;  %v1543_v14 = vld [vmem:[%s2438_s7 + $0xb8] sm:$0xff]  ;;  %v1537_v15 = vld [vmem:[%s2438_s7 + $0x88] sm:$0xff] }
  0x34   :  { %1588 = vset.pattern.permute.xlu0 %v1696_v0  ;;  %v1542_v0 = vld [vmem:[%s2438_s7 + $0xb0] sm:$0xff] }
  0x35   :  { %402 = vperm.xlu1 %1587, %v330_v16   ;;  %407 = vperm.xlu2 %1585, %v331_v17   ;;  %v1540_v16 = vld [vmem:[%s2438_s7 + $0xa0] sm:$0xff] }
  0x36   :  { %484 = vperm.xlu0 %1588, %v335_v18  }
  0x3d   :  { %479 = vperm.xlu1 %1587, %v334_v19   ;;  %508 = vperm.xlu2 %1585, %v339_v20  }
  0x3e   :  { %469 = vperm.xlu0 %1588, %v332_v21  }
  0x45   :  { %474 = vperm.xlu1 %1587, %v333_v22   ;;  %503 = vperm.xlu2 %1585, %v338_v23  }
  0x46   :  { %493 = vperm.xlu0 %1588, %v336_v24  }
  0x4d   :  { %498 = vperm.xlu1 %1587, %v337_v25   ;;  %199 = vperm.xlu2 %1585, %v48_v26   ;;  %v35_v25 = vld [vmem:[%s2435_s0] sm:$0x3] }
  0x4e   :  { %184 = vperm.xlu0 %1588, %v45_v27  }
  0x55   :  { %194 = vperm.xlu1 %1587, %v47_v28   ;;  %189 = vperm.xlu2 %1585, %v46_v29  }
  0x56   :  { %765 = vperm.xlu0 %1588, %v698_v30   ;;  %v1536_v30 = vld [vmem:[%s2438_s7 + $0x80] sm:$0xff] }
  0x5d   :  { %755 = vperm.xlu1 %1587, %v696_v31   ;;  %760 = vperm.xlu2 %1585, %v697_v32   ;;  %v87_v37 = vpop.permute.xlu2 %86  ;;  %v1541_v31 = vld [vmem:[%s2438_s7 + $0xa8] sm:$0xff] }
  0x5e   :  { %835 = vperm.xlu0 %1588, %v702_v33  }
  0x65   :  { %770 = vperm.xlu1 %1587, %v699_v34   ;;  %840 = vperm.xlu2 %1585, %v703_v35   ;;  %v52_v44 = vpop.permute.xlu2 %51  ;;  %v1935_v34 = vperm.slane %v35_v25, 1 }
  0x66   :  { %859 = vperm.xlu0 %1588, %v706_v36   ;;  %v70_v63 = vmul.f32 %v1589_v41, %v52_v44  ;;  %v1554_v36 = vld [vmem:[%s2438_s7 + $0xd0] sm:$0xff] }
  0x6d   :  { %864 = vperm.xlu1 %1587, %v707_v38   ;;  %830 = vperm.xlu2 %1585, %v701_v39   ;;  %v1892_v56 = vpop.permute.xlu2 %342 }
  0x6e   :  { %849 = vperm.xlu0 %1588, %v704_v40   ;;  %v360_v40 = vperm.slane %v35_v25, 0 }
  0x74   :  { %v92_v46 = vpop.permute.xlu1 %91 }
  0x75   :  { %v67_v47 = vpop.permute.xlu0 %66  ;;  %825 = vperm.xlu1 %1587, %v700_v42   ;;  %854 = vperm.xlu2 %1585, %v705_v43  }
  0x76   :  { %v73_v48 = vmul.f32 %v1589_v41, %v67_v47  ;;  %1026 = vperm.xlu0 %1588, %v1534_v45   ;;  %v371_v9 = vpop.permute.xlu2 %370 }
  0x77   :  { %v383_v45 = vmul.f32 %v1935_v34, %v371_v9 }
  0x78   :  { %v1880_v49 = vadd.f32 %v92_v46, %v73_v48 }
  0x7a   :  { %v101_v52 = vsub.f32 0.0, %v1880_v49 }
  0x7c   :  { %v57_v54 = vpop.permute.xlu1 %56  ;;  %v108_v55 = vmul.f32 1.442695, %v101_v52 }
  0x7d   :  { %v62_v57 = vpop.permute.xlu0 %61  ;;  %1016 = vperm.xlu1 %1587, %v1532_v50   ;;  %1021 = vperm.xlu2 %1585, %v1533_v51   ;;  %v71_v3 = vmul.f32 %v1589_v41, %v57_v54 }
  0x7e   :  { %v72_v58 = vmul.f32 %v1589_v41, %v62_v57  ;;  %1096 = vperm.xlu0 %1588, %v1538_v53   ;;  %1590 = vpow2.f32 %v108_v55  ;;  %v361_v55 = vmul.f32 %v360_v40, %v1892_v56  ;;  %v1552_v57 = vld [vmem:[%s2438_s7 + $0xc0] sm:$0xff] }
  0x7f   :  { %v358_v26 = vpop.permute.xlu2 %357 }
  0x80   :  { %v1894_v59 = vadd.f32 %v87_v37, %v72_v58  ;;  %v1553_v58 = vld [vmem:[%s2438_s7 + $0xc8] sm:$0xff] }
  0x82   :  { %v100_v60 = vsub.f32 0.0, %v1894_v59 }
  0x84   :  { %v1591_v1 = vpop.eup %1590  ;;  %v106_v2 = vmul.f32 1.442695, %v100_v60  ;;  %v77_v4 = vpop.permute.xlu1 %76 }
  0x85   :  { %v82_v5 = vpop.permute.xlu0 %81  ;;  %1031 = vperm.xlu1 %1587, %v1535_v61   ;;  %v1906_v6 = vadd.f32 %v77_v4, %v70_v63  ;;  %1101 = vperm.xlu2 %1585, %v1539_v62   ;;  %v113_v7 = vadd.f32 1.0, %v1591_v1  ;;  %v364_v61 = vmul.f32 %v360_v40, %v358_v26  ;;  %v1698_v63 = vmov 32.0  }
  0x86   :  { %1592 = vpow2.f32 %v106_v2  ;;  %v1908_v8 = vadd.f32 %v82_v5, %v71_v3  ;;  %1120 = vperm.xlu0 %1588, %v1542_v0   ;;  %v1558_v0 = vld [vmem:[%s2438_s7 + $0xf0] sm:$0xff] }
  0x87   :  { %v98_v10 = vsub.f32 0.0, %v1906_v6  ;;  %1594 = vrcp.f32 %v113_v7  ;;  %v170_v27 = vand.u32 2147483648, %v113_v7  ;;  %v168_v33 = vand.u32 2147483647, %v113_v7  ;;  %v398_v62 = vpop.permute.xlu2 %397 }
  0x88   :  { %v99_v11 = vsub.f32 0.0, %v1908_v8  ;;  %vm164_vm1 = vweird.f32 %v113_v7 }
  0x89   :  { %v102_v12 = vmul.f32 1.442695, %v98_v10  ;;  %v171_v39 = vor.u32 1.1754944e-38, %v170_v27  ;;  %vm169_vm3 = vcmp.eq.f32.partialorder %v168_v33, 8.507059e+37  ;;  %v1562_v33 = vld [vmem:[%s2438_s7 + $0x110] sm:$0xff] }
  0x8a   :  { %v104_v13 = vmul.f32 1.442695, %v99_v11 }
  0x8b   :  { %1596 = vpow2.f32 %v102_v12 }
  0x8c   :  { %v1593_v17 = vpop.eup %1592  ;;  %1598 = vpow2.f32 %v104_v13 }
  0x8d   :  { %v1595_v18 = vpop.eup %1594  ;;  %v1921_v19 = vadd.f32 1.0, %v1593_v17  ;;  %v348_v20 = vpop.permute.xlu0 %347  ;;  %1125 = vperm.xlu1 %1587, %v1543_v14   ;;  %1091 = vperm.xlu2 %1585, %v1537_v15  }
  0x8e   :  { %v367_v21 = vpop.permute.xlu1 %366  ;;  %v160_v22 = vmul.f32 %v1595_v18, %v113_v7  ;;  %1110 = vperm.xlu0 %1588, %v1540_v16   ;;  %vm165_vm0 = vweird.f32 %v1595_v18  ;;  %v362_v47 = vmul.f32 %v360_v40, %v348_v20 }
  0x8f   :  { %1600 = vrcp.f32 %v1921_v19  ;;  %vm166_vm2 = vmor %vm164_vm1, %vm165_vm0  ;;  %v382_v48 = vmul.f32 %v1935_v34, %v367_v21  ;;  %v153_v52 = vand.u32 2147483647, %v1921_v19  ;;  %v155_v53 = vand.u32 2147483648, %v1921_v19 }
  0x90   :  { %v161_v23 = vsub.f32 1.0, %v160_v22  ;;  %vm149_vm5 = vweird.f32 %v1921_v19  ;;  %v387_v1 = vadd.f32 %v383_v45, %v362_v47  ;;  %vm202_vm0 = vcmask 261120  }
  0x91   :  { %v1597_v24 = vpop.eup %1596  ;;  %v386_v2 = vadd.f32 %v382_v48, %v361_v55  ;;  %vm154_vm7 = vcmp.eq.f32.partialorder %v153_v52, 8.507059e+37  ;;  %v156_v5 = vor.u32 1.1754944e-38, %v155_v53 }
  0x92   :  { %v1599_v28 = vpop.eup %1598  ;;  %v1927_v29 = vadd.f32 1.0, %v1597_v24  ;;  %v162_v32 = vmul.f32 %v1595_v18, %v161_v23 }
  0x93   :  { %v1937_v35 = vadd.f32 1.0, %v1599_v28  ;;  %v1559_v28 = vld [vmem:[%s2438_s7 + $0xf8] sm:$0xff] }
  0x94   :  { %1602 = vrcp.f32 %v1927_v29  ;;  %v163_v37 = vadd.f32 %v1595_v18, %v162_v32  ;;  %v125_v14 = vand.u32 2147483648, %v1927_v29  ;;  %v123_v21 = vand.u32 2147483647, %v1927_v29 }
  0x95   :  { %v1601_v38 = vpop.eup %1600  ;;  %1604 = vrcp.f32 %v1937_v35  ;;  %1086 = vperm.xlu1 %1587, %v1536_v30   ;;  %1115 = vperm.xlu2 %1585, %v1541_v31   ;;  %v353_v41 = vpop.permute.xlu0 %352  ;;  %v138_v7 = vand.u32 2147483647, %v1937_v35  ;;  %v140_v13 = vand.u32 2147483648, %v1937_v35  ;;  %vm134_vm10 = vweird.f32 %v1937_v35 }
  0x96   :  { %v375_v42 = vpop.permute.xlu1 %374  ;;  %v167_v43 = vsel %vm166_vm2, %v1595_v18, %v163_v37  ;;  %v145_v44 = vmul.f32 %v1601_v38, %v1921_v19  ;;  %1287 = vperm.xlu0 %1588, %v1554_v36   ;;  %vm150_vm4 = vweird.f32 %v1601_v38  ;;  %1606 = vrcp.f32 %v1698_v63  ;;  %v408_v36 = vpop.permute.xlu2 %407 }
  0x97   :  { %v172_v46 = vsel %vm169_vm3, %v171_v39, %v167_v43  ;;  %vm151_vm6 = vmor %vm149_vm5, %vm150_vm4  ;;  %v363_v23 = vmul.f32 %v360_v40, %v353_v41  ;;  %vm119_vm11 = vweird.f32 %v1927_v29  ;;  %v384_v25 = vmul.f32 %v1935_v34, %v375_v42 }
  0x98   :  { %v177_v50 = vmul.f32 %v172_v46, %v1880_v49  ;;  %v146_v51 = vsub.f32 1.0, %v145_v44  ;;  %v126_v32 = vor.u32 1.1754944e-38, %v125_v14  ;;  %vm139_vm14 = vcmp.eq.f32.partialorder %v138_v7, 8.507059e+37 }
  0x99   :  { %vm124_vm15 = vcmp.eq.f32.partialorder %v123_v21, 8.507059e+37  ;;  %v388_v41 = vadd.f32 %v384_v25, %v363_v23  ;;  %v181_v23 = vld [vmem:[%s2439_s2 + $0x18] sm:$0xff] }
  0x9a   :  { %v1950_v54 = vpop.eup %1602  ;;  %227 = vmatpush.msra.mxu0 %v177_v50  ;;  %v147_v60 = vmul.f32 %v1601_v38, %v146_v51 }
  0x9b   :  { %v1605_v49 = vpop.eup %1604  ;;  %v115_v56 = vmul.f32 %v1950_v54, %v1927_v29  ;;  %vm120_vm8 = vweird.f32 %v1950_v54  ;;  %v141_v29 = vor.u32 1.1754944e-38, %v140_v13 }
  0x9c   :  { %v148_v3 = vadd.f32 %v1601_v38, %v147_v60  ;;  %v130_v4 = vmul.f32 %v1605_v49, %v1937_v35  ;;  %vm135_vm9 = vweird.f32 %v1605_v49  ;;  %v1975_v22 = vpop.eup %1606  ;;  %vm121_vm12 = vmor %vm119_vm11, %vm120_vm8 }
  0x9d   :  { %1277 = vperm.xlu1 %1587, %v1552_v57   ;;  %1282 = vperm.xlu2 %1585, %v1553_v58   ;;  %v116_v9 = vsub.f32 1.0, %v115_v56  ;;  %vm136_vm13 = vmor %vm134_vm10, %vm135_vm9  ;;  %v424_v43 = vmul.f32 32.0, %v1975_v22  ;;  %v1560_v57 = vld [vmem:[%s2438_s7 + $0x100] sm:$0xff]  ;;  %vm428_vm1 = vweird.f32 %v1975_v22 }
  0x9e   :  { %v152_v10 = vsel %vm151_vm6, %v1601_v38, %v148_v3  ;;  %v379_v11 = vpop.permute.xlu0 %378  ;;  %v131_v12 = vsub.f32 1.0, %v130_v4  ;;  %1357 = vperm.xlu0 %1588, %v1558_v0   ;;  %v179_v0 = vld [vmem:[%s2439_s2 + $0x8] sm:$0xff]  ;;  %v1556_v3 = vld [vmem:[%s2438_s7 + $0xe0] sm:$0xff] }
  0x9f   :  { %v393_v15 = vpop.permute.xlu1 %392  ;;  %v157_v16 = vsel %vm154_vm7, %v156_v5, %v152_v10  ;;  %v385_v17 = vmul.f32 %v1935_v34, %v379_v11  ;;  %v117_v18 = vmul.f32 %v1950_v54, %v116_v9  ;;  %v1996_v34 = vadd.f32 %v398_v62, %v387_v1  ;;  %v1561_v4 = vld [vmem:[%s2438_s7 + $0x108] sm:$0xff] }
  0xa0   :  { %v176_v19 = vmul.f32 %v157_v16, %v1894_v59  ;;  %v132_v20 = vmul.f32 %v1605_v49, %v131_v12  ;;  %v1981_v26 = vadd.f32 %v393_v15, %v386_v2  ;;  %v1555_v59 = vld [vmem:[%s2438_s7 + $0xd8] sm:$0xff]  ;;  %v425_v55 = vsub.f32 1.0, %v424_v43  ;;  %v180_v15 = vld [vmem:[%s2439_s2 + $0x10] sm:$0xff] }
  0xa1   :  { %v118_v24 = vadd.f32 %v1950_v54, %v117_v18  ;;  %v389_v27 = vadd.f32 %v385_v17, %v364_v61  ;;  %v432_v46 = vmul.f32 %v1996_v34, %v1996_v34  ;;  %v1478_v18 = vld [vmem:[%s2440_s9] sm:$0x3] }
  0xa2   :  { %228 = vmatpush.msra.mxu0 %v176_v19  ;;  %v133_v30 = vadd.f32 %v1605_v49, %v132_v20  ;;  %v431_v39 = vmul.f32 %v1981_v26, %v1981_v26  ;;  %v414_v45 = vadd.f32 %v1996_v34, %v1981_v26  ;;  %v426_v62 = vmul.f32 %v1975_v22, %v425_v55 }
  0xa3   :  { %v122_v31 = vsel %vm121_vm12, %v1950_v54, %v118_v24  ;;  %v2000_v40 = vadd.f32 %v408_v36, %v389_v27  ;;  %v1563_v54 = vld [vmem:[%s2438_s7 + $0x118] sm:$0xff] }
  0xa4   :  { %v137_v35 = vsel %vm136_vm13, %v1605_v49, %v133_v30  ;;  %v127_v38 = vsel %vm124_vm15, %v126_v32, %v122_v31  ;;  %v435_v50 = vadd.f32 %v432_v46, %v431_v39  ;;  %v427_v5 = vadd.f32 %v1975_v22, %v426_v62 }
  0xa5   :  { %1292 = vperm.xlu1 %1587, %v1555_v59   ;;  %1362 = vperm.xlu2 %1585, %v1559_v28   ;;  %v142_v37 = vsel %vm139_vm14, %v141_v29, %v137_v35  ;;  %v174_v48 = vmul.f32 %v127_v38, %v1906_v6  ;;  %v434_v51 = vmul.f32 %v2000_v40, %v2000_v40  ;;  %v1557_v6 = vld [vmem:[%s2438_s7 + $0xe8] sm:$0xff]  ;;  %v509_v29 = vpop.permute.xlu2 %508 }
  0xa6   :  { %v175_v42 = vmul.f32 %v142_v37, %v1908_v8  ;;  %1381 = vperm.xlu0 %1588, %v1562_v33   ;;  %v178_v8 = vld [vmem:[%s2439_s2] sm:$0xff]  ;;  %v2044_v12 = vsel %vm428_vm1, %v1975_v22, %v427_v5 }
  0xa7   :  { %v403_v44 = vpop.permute.xlu1 %402 }
  0xa8   :  { %v2008_v47 = vadd.f32 %v403_v44, %v388_v41  ;;  %229 = vmatpush.msra.mxu0 %v175_v42  ;;  %v485_v27 = vpop.permute.xlu0 %484 }
  0xaa   :  { %v415_v52 = vadd.f32 %v414_v45, %v2008_v47  ;;  %v433_v53 = vmul.f32 %v2008_v47, %v2008_v47  ;;  %230 = vmatpush.msra.mxu0 %v174_v48 }
  0xab   :  { %1512 = vmatmul.msk.f32.vlgmr.msra.gmra.mxu0 %vm202_vm0, %v178_v8 }
  0xac   :  { %v416_v58 = vadd.f32 %v415_v52, %v2000_v40  ;;  %v436_v60 = vadd.f32 %v435_v50, %v433_v53 }
  0xad   :  { %1386 = vperm.xlu1 %1587, %v1563_v54   ;;  %1352 = vperm.xlu2 %1585, %v1557_v6   ;;  %v504_v48 = vpop.permute.xlu2 %503 }
  0xae   :  { %v417_v49 = vrot.slane %v416_v58, 4  ;;  %v437_v61 = vadd.f32 %v436_v60, %v434_v51  ;;  %1371 = vperm.xlu0 %1588, %v1560_v57  }
  0xaf   :  { %v480_v25 = vpop.permute.xlu1 %479 }
  0xb0   :  { %v418_v63 = vadd.f32 %v417_v49, %v416_v58  ;;  %v438_v56 = vrot.slane %v437_v61, 4  ;;  %v470_v33 = vpop.permute.xlu0 %469 }
  0xb2   :  { %v419_v1 = vrot.slane %v418_v63, 2  ;;  %v439_v2 = vadd.f32 %v438_v56, %v437_v61 }
  0xb3   :  { %1513 = vmatmul.msk.f32.gmra.mxu0 %vm202_vm0, %v179_v0 }
  0xb4   :  { %v420_v7 = vadd.f32 %v419_v1, %v418_v63  ;;  %v440_v9 = vrot.slane %v439_v2, 2 }
  0xb5   :  { %1347 = vperm.xlu1 %1587, %v1556_v3   ;;  %1376 = vperm.xlu2 %1585, %v1561_v4  }
  0xb6   :  { %v421_v10 = vrot.slane %v420_v7, 1  ;;  %v441_v11 = vadd.f32 %v440_v9, %v439_v2 }
  0xb7   :  { %v475_v32 = vpop.permute.xlu1 %474 }
  0xb8   :  { %v422_v13 = vadd.f32 %v421_v10, %v420_v7  ;;  %v442_v14 = vrot.slane %v441_v11, 1  ;;  %v494_v54 = vpop.permute.xlu0 %493 }
  0xba   :  { %v430_v16 = vmul.f32 %v2044_v12, %v422_v13  ;;  %v443_v17 = vadd.f32 %v442_v14, %v441_v11 }
  0xbb   :  { %1514 = vmatmul.msk.f32.gmra.mxu0 %vm202_vm0, %v180_v15 }
  0xbc   :  { %v444_v19 = vmul.f32 %v443_v17, %v2044_v12  ;;  %v445_v20 = vmul.f32 %v430_v16, %v430_v16  ;;  %v450_v37 = vsub.f32 %v2008_v47, %v430_v16  ;;  %v451_v38 = vsub.f32 %v2000_v40, %v430_v16 }
  0xbd   :  { %1481 = vperm.xlu1 %1587, %v1478_v18   ;;  %v449_v39 = vsub.f32 %v1996_v34, %v430_v16  ;;  %v448_v41 = vsub.f32 %v1981_v26, %v430_v16 }
  0xbe   :  { %v446_v21 = vsub.f32 %v444_v19, %v445_v20  ;;  %v709_v19 = vld [vmem:[%s2441_s5 + $0x8] sm:$0xff] }
  0xbf   :  { %v499_v53 = vpop.permute.xlu1 %498 }
  0xc0   :  { %v447_v22 = vmax.f32 %v446_v21, 0.0 }
  0xc2   :  { %v452_v24 = vadd.f32 1e-05, %v447_v22 }
  0xc3   :  { %1515 = vmatmul.msk.f32.gmra.mxu0 %vm202_vm0, %v181_v23 }
  0xc4   :  { %1608 = vrsqrt.f32 %v452_v24  ;;  %vm459_vm3 = vweird.f32 %v452_v24 }
  0xca   :  { %v1609_v59 = vpop.eup %1608 }
  0xcb   :  { %v454_v28 = vmul.f32 %v1609_v59, %v452_v24  ;;  %vm460_vm2 = vweird.f32 %v1609_v59 }
  0xcc   :  { %vm461_vm4 = vmor %vm459_vm3, %vm460_vm2 }
  0xcd   :  { %v455_v30 = vmul.f32 %v1609_v59, %v454_v28 }
  0xcf   :  { %v456_v31 = vmul.f32 0.5, %v455_v30 }
  0xd1   :  { %v457_v35 = vsub.f32 1.5, %v456_v31 }
  0xd3   :  { %v458_v36 = vmul.f32 %v1609_v59, %v457_v35 }
  0xd5   :  { %v462_v42 = vsel %vm461_vm4, %v1609_v59, %v458_v36 }
  0xd6   :  { %v465_v43 = vmul.f32 %v462_v42, %v450_v37  ;;  %v466_v44 = vmul.f32 %v462_v42, %v451_v38  ;;  %v464_v45 = vmul.f32 %v462_v42, %v449_v39  ;;  %v463_v46 = vmul.f32 %v462_v42, %v448_v41 }
  0xd8   :  { %v489_v8 = vmul.f32 %v480_v25, %v465_v43  ;;  %v490_v50 = vmul.f32 %v485_v27, %v466_v44  ;;  %v488_v51 = vmul.f32 %v475_v32, %v464_v45  ;;  %v487_v52 = vmul.f32 %v470_v33, %v463_v46 }
  0xda   :  { %v2063_v47 = vadd.f32 %v504_v48, %v489_v8  ;;  %v2065_v6 = vadd.f32 %v509_v29, %v490_v50  ;;  %v2067_v40 = vadd.f32 %v499_v53, %v488_v51  ;;  %v2069_v34 = vadd.f32 %v494_v54, %v487_v52 }
  0xdc   :  { %v517_v26 = vsub.f32 0.0, %v2063_v47  ;;  %v518_v55 = vsub.f32 0.0, %v2065_v6  ;;  %v516_v57 = vsub.f32 0.0, %v2067_v40  ;;  %v515_v58 = vsub.f32 0.0, %v2069_v34 }
  0xde   :  { %v523_v60 = vmul.f32 1.442695, %v517_v26  ;;  %v525_v49 = vmul.f32 1.442695, %v518_v55  ;;  %v521_v61 = vmul.f32 1.442695, %v516_v57  ;;  %v200_v57 = vpop.permute.xlu2 %199 }
  0xdf   :  { %v519_v62 = vmul.f32 1.442695, %v515_v58 }
  0xe0   :  { %1610 = vpow2.f32 %v523_v60  ;;  %v185_v60 = vpop.permute.xlu0 %184 }
  0xe1   :  { %1612 = vpow2.f32 %v525_v49 }
  0xe2   :  { %1614 = vpow2.f32 %v521_v61 }
  0xe3   :  { %1616 = vpow2.f32 %v519_v62 }
  0xe6   :  { %v1611_v63 = vpop.eup %1610 }
  0xe7   :  { %v1613_v56 = vpop.eup %1612  ;;  %v529_v0 = vadd.f32 1.0, %v1611_v63 }
  0xe8   :  { %v1615_v1 = vpop.eup %1614  ;;  %v530_v2 = vadd.f32 1.0, %v1613_v56 }
  0xe9   :  { %v1617_v3 = vpop.eup %1616  ;;  %1618 = vrcp.f32 %v529_v0  ;;  %v528_v4 = vadd.f32 1.0, %v1615_v1  ;;  %v570_v7 = vand.u32 2147483647, %v529_v0  ;;  %vm566_vm6 = vweird.f32 %v529_v0  ;;  %v195_v1 = vpop.permute.xlu1 %194 }
  0xea   :  { %1620 = vrcp.f32 %v530_v2  ;;  %v527_v5 = vadd.f32 1.0, %v1617_v3  ;;  %v585_v10 = vand.u32 2147483647, %v530_v2  ;;  %vm581_vm5 = vweird.f32 %v530_v2 }
  0xeb   :  { %1622 = vrcp.f32 %v528_v4  ;;  %v587_v17 = vand.u32 2147483648, %v530_v2  ;;  %vm2075_vm7 = vcmp.eq.f32.partialorder %v570_v7, 8.507059e+37  ;;  %v572_v23 = vand.u32 2147483648, %v529_v0 }
  0xec   :  { %1624 = vrcp.f32 %v527_v5  ;;  %vm2079_vm8 = vcmp.eq.f32.partialorder %v585_v10, 8.507059e+37  ;;  %vm551_vm10 = vweird.f32 %v528_v4  ;;  %v555_v28 = vand.u32 2147483647, %v528_v4 }
  0xed   :  { %v557_v32 = vand.u32 2147483648, %v528_v4  ;;  %v588_v35 = vor.u32 1.1754944e-38, %v587_v17  ;;  %v573_v38 = vor.u32 1.1754944e-38, %v572_v23  ;;  %v542_v41 = vand.u32 2147483648, %v527_v5 }
  0xee   :  { %vm536_vm2 = vweird.f32 %v527_v5  ;;  %v540_v44 = vand.u32 2147483647, %v527_v5  ;;  %vm556_vm4 = vcmp.eq.f32.partialorder %v555_v28, 8.507059e+37 }
  0xef   :  { %v1619_v9 = vpop.eup %1618  ;;  %v558_v8 = vor.u32 1.1754944e-38, %v557_v32  ;;  %v543_v53 = vor.u32 1.1754944e-38, %v542_v41 }
  0xf0   :  { %v1621_v11 = vpop.eup %1620  ;;  %v562_v13 = vmul.f32 %v1619_v9, %v529_v0  ;;  %vm567_vm9 = vweird.f32 %v1619_v9 }
  0xf1   :  { %v1623_v14 = vpop.eup %1622  ;;  %v577_v15 = vmul.f32 %v1621_v11, %v530_v2  ;;  %vm582_vm11 = vweird.f32 %v1621_v11  ;;  %vm568_vm13 = vmor %vm566_vm6, %vm567_vm9 }
  0xf2   :  { %v1625_v16 = vpop.eup %1624  ;;  %v563_v18 = vsub.f32 1.0, %v562_v13  ;;  %v547_v20 = vmul.f32 %v1623_v14, %v528_v4  ;;  %vm552_vm12 = vweird.f32 %v1623_v14  ;;  %vm583_vm15 = vmor %vm581_vm5, %vm582_vm11  ;;  %vm541_vm5 = vcmp.eq.f32.partialorder %v540_v44, 8.507059e+37  ;;  %v711_v44 = vld [vmem:[%s2441_s5 + $0x18] sm:$0xff] }
  0xf3   :  { %v578_v21 = vsub.f32 1.0, %v577_v15  ;;  %v532_v24 = vmul.f32 %v1625_v16, %v527_v5  ;;  %vm537_vm14 = vweird.f32 %v1625_v16  ;;  %vm553_vm1 = vmor %vm551_vm10, %vm552_vm12  ;;  %v708_v15 = vld [vmem:[%s2441_s5] sm:$0xff] }
  0xf4   :  { %v564_v25 = vmul.f32 %v1619_v9, %v563_v18  ;;  %v548_v27 = vsub.f32 1.0, %v547_v20  ;;  %vm538_vm3 = vmor %vm536_vm2, %vm537_vm14 }
  0xf5   :  { %v579_v59 = vmul.f32 %v1621_v11, %v578_v21  ;;  %v533_v30 = vsub.f32 1.0, %v532_v24 }
  0xf6   :  { %v565_v29 = vadd.f32 %v1619_v9, %v564_v25  ;;  %v549_v31 = vmul.f32 %v1623_v14, %v548_v27 }
  0xf7   :  { %v580_v33 = vadd.f32 %v1621_v11, %v579_v59  ;;  %v534_v36 = vmul.f32 %v1625_v16, %v533_v30  ;;  %v710_v30 = vld [vmem:[%s2441_s5 + $0x10] sm:$0xff] }
  0xf8   :  { %v569_v37 = vsel %vm568_vm13, %v1619_v9, %v565_v29  ;;  %v550_v39 = vadd.f32 %v1623_v14, %v549_v31 }
  0xf9   :  { %v584_v42 = vsel %vm583_vm15, %v1621_v11, %v580_v33  ;;  %v535_v43 = vadd.f32 %v1625_v16, %v534_v36  ;;  %v574_v46 = vsel %vm2075_vm7, %v573_v38, %v569_v37 }
  0xfa   :  { %v589_v45 = vsel %vm2079_vm8, %v588_v35, %v584_v42  ;;  %v554_v48 = vsel %vm553_vm1, %v1623_v14, %v550_v39  ;;  %v2096_v54 = vmul.f32 %v574_v46, %v2063_v47  ;;  %v190_v47 = vpop.permute.xlu2 %189 }
  0xfb   :  { %v2092_v50 = vmul.f32 %v589_v45, %v2065_v6  ;;  %v539_v51 = vsel %vm538_vm3, %v1625_v16, %v535_v43  ;;  %v559_v52 = vsel %vm556_vm4, %v558_v8, %v554_v48 }
  0xfc   :  { %v544_v26 = vsel %vm541_vm5, %v543_v53, %v539_v51  ;;  %v2100_v55 = vmul.f32 %v559_v52, %v2067_v40 }
  0xfd   :  { %736 = vmatpush.msra.mxu2 %v2092_v50  ;;  %v2104_v6 = vmul.f32 %v544_v26, %v2069_v34 }
  0xff   :  { %737 = vmatpush.msra.mxu2 %v2096_v54 }
 0x101   :  { %738 = vmatpush.msra.mxu2 %v2100_v55 }
 0x103   :  { %739 = vmatpush.msra.mxu2 %v2104_v6 }
 0x104   :  { %1528 = vmatmul.msk.f32.vlgmr.msra.gmra.mxu2 %vm202_vm0, %v708_v15 }
 0x10c   :  { %1529 = vmatmul.msk.f32.gmra.mxu2 %vm202_vm0, %v709_v19 }
 0x114   :  { %1530 = vmatmul.msk.f32.gmra.mxu2 %vm202_vm0, %v710_v30 }
 0x11c   :  { %1531 = vmatmul.msk.f32.gmra.mxu2 %vm202_vm0, %v711_v44 }
 0x128   :  { %v232_v58 = vpop.f32.mrf.mxu0 }
 0x129   :  { %v2107_v49 = vadd.f32 %v232_v58, %v185_v60 }
 0x12b   :  { %v244_v61 = vsub.f32 0.0, %v2107_v49 }
 0x12d   :  { %v248_v56 = vmul.f32 1.442695, %v244_v61 }
 0x12f   :  { %1626 = vpow2.f32 %v248_v56 }
 0x130   :  { %v235_v62 = vpop.f32.mrf.mxu0 }
 0x131   :  { %v2110_v63 = vadd.f32 %v235_v62, %v190_v47 }
 0x133   :  { %v245_v40 = vsub.f32 0.0, %v2110_v63 }
 0x135   :  { %v250_v0 = vmul.f32 1.442695, %v245_v40  ;;  %v1627_v5 = vpop.eup %1626 }
 0x136   :  { %v2116_v10 = vadd.f32 1.0, %v1627_v5 }
 0x137   :  { %1628 = vpow2.f32 %v250_v0 }
 0x138   :  { %v238_v34 = vpop.f32.mrf.mxu0  ;;  %vm265_vm6 = vweird.f32 %v2116_v10  ;;  %v269_v61 = vand.u32 2147483647, %v2116_v10  ;;  %v271_v62 = vand.u32 2147483648, %v2116_v10 }
 0x139   :  { %v2113_v2 = vadd.f32 %v238_v34, %v195_v1 }
 0x13b   :  { %v246_v3 = vsub.f32 0.0, %v2113_v2 }
 0x13d   :  { %v252_v4 = vmul.f32 1.442695, %v246_v3  ;;  %v1629_v7 = vpop.eup %1628 }
 0x13e   :  { %v2120_v13 = vadd.f32 1.0, %v1629_v7  ;;  %v272_v7 = vor.u32 1.1754944e-38, %v271_v62 }
 0x13f   :  { %1630 = vpow2.f32 %v252_v4 }
 0x140   :  { %v241_v9 = vpop.f32.mrf.mxu0  ;;  %1632 = vrcp.f32 %v2116_v10  ;;  %vm280_vm12 = vweird.f32 %v2120_v13  ;;  %v284_v51 = vand.u32 2147483647, %v2120_v13  ;;  %v286_v52 = vand.u32 2147483648, %v2120_v13 }
 0x141   :  { %v2118_v11 = vadd.f32 %v241_v9, %v200_v57  ;;  %1634 = vrcp.f32 %v2120_v13 }
 0x142   :  { %v287_v34 = vor.u32 1.1754944e-38, %v286_v52  ;;  %vm285_vm5 = vcmp.eq.f32.partialorder %v284_v51, 8.507059e+37 }
 0x143   :  { %v247_v14 = vsub.f32 0.0, %v2118_v11 }
 0x145   :  { %v1631_v16 = vpop.eup %1630  ;;  %v254_v17 = vmul.f32 1.442695, %v247_v14 }
 0x146   :  { %v258_v18 = vadd.f32 1.0, %v1631_v16  ;;  %v2132_v20 = vpop.eup %1632 }
 0x147   :  { %1636 = vpow2.f32 %v254_v17  ;;  %v1635_v21 = vpop.eup %1634  ;;  %v261_v59 = vmul.f32 %v2132_v20, %v2116_v10  ;;  %vm266_vm13 = vweird.f32 %v2132_v20 }
 0x148   :  { %1638 = vrcp.f32 %v258_v18  ;;  %v276_v27 = vmul.f32 %v1635_v21, %v2120_v13  ;;  %vm281_vm8 = vweird.f32 %v1635_v21  ;;  %vm295_vm9 = vweird.f32 %v258_v18  ;;  %vm267_vm4 = vmor %vm265_vm6, %vm266_vm13 }
 0x149   :  { %v262_v31 = vsub.f32 1.0, %v261_v59  ;;  %v299_v42 = vand.u32 2147483647, %v258_v18  ;;  %v301_v43 = vand.u32 2147483648, %v258_v18  ;;  %vm2159_vm15 = vmor %vm280_vm12, %vm281_vm8  ;;  %v766_v59 = vpop.permute.xlu0 %765 }
 0x14a   :  { %v277_v29 = vsub.f32 1.0, %v276_v27 }
 0x14b   :  { %v263_v37 = vmul.f32 %v2132_v20, %v262_v31  ;;  %v302_v47 = vor.u32 1.1754944e-38, %v301_v43  ;;  %vm300_vm3 = vcmp.eq.f32.partialorder %v299_v42, 8.507059e+37 }
 0x14c   :  { %v278_v36 = vmul.f32 %v1635_v21, %v277_v29 }
 0x14d   :  { %v1637_v22 = vpop.eup %1636  ;;  %v264_v58 = vadd.f32 %v2132_v20, %v263_v37 }
 0x14e   :  { %v1639_v23 = vpop.eup %1638  ;;  %v259_v24 = vadd.f32 1.0, %v1637_v22  ;;  %v279_v48 = vadd.f32 %v1635_v21, %v278_v36 }
 0x14f   :  { %v291_v25 = vmul.f32 %v1639_v23, %v258_v18  ;;  %vm296_vm7 = vweird.f32 %v1639_v23  ;;  %v268_v4 = vsel %vm267_vm4, %v2132_v20, %v264_v58 }
 0x150   :  { %1640 = vrcp.f32 %v259_v24  ;;  %v316_v41 = vand.u32 2147483648, %v259_v24  ;;  %v314_v46 = vand.u32 2147483647, %v259_v24  ;;  %vm2147_vm11 = vmor %vm295_vm9, %vm296_vm7  ;;  %vm310_vm14 = vweird.f32 %v259_v24 }
 0x151   :  { %v292_v28 = vsub.f32 1.0, %v291_v25  ;;  %v283_v56 = vsel %vm2159_vm15, %v1635_v21, %v279_v48  ;;  %vm270_vm7 = vcmp.eq.f32.partialorder %v269_v61, 8.507059e+37  ;;  %v756_v21 = vpop.permute.xlu1 %755  ;;  %v761_v25 = vpop.permute.xlu2 %760 }
 0x152   :  { %v317_v60 = vor.u32 1.1754944e-38, %v316_v41  ;;  %vm315_vm2 = vcmp.eq.f32.partialorder %v314_v46, 8.507059e+37  ;;  %v288_v5 = vsel %vm285_vm5, %v287_v34, %v283_v56  ;;  %v273_v13 = vsel %vm270_vm7, %v272_v7, %v268_v4  ;;  %v604_v34 = vld [vmem:[%s2442_s6 + $0x48] sm:$0xff]  ;;  %v605_v7 = vld [vmem:[%s2442_s6 + $0x50] sm:$0xff] }
 0x153   :  { %v293_v32 = vmul.f32 %v1639_v23, %v292_v28  ;;  %v321_v14 = vmul.f32 %v288_v5, %v2110_v63  ;;  %v320_v10 = vmul.f32 %v273_v13, %v2107_v49  ;;  %v597_v63 = vld [vmem:[%s2442_s6 + $0x10] sm:$0xff]  ;;  %v598_v49 = vld [vmem:[%s2442_s6 + $0x18] sm:$0xff]  ;;  %v836_v13 = vpop.permute.xlu0 %835 }
 0x155   :  { %v294_v39 = vadd.f32 %v1639_v23, %v293_v32 }
 0x156   :  { %v1641_v33 = vpop.eup %1640 }
 0x157   :  { %v306_v35 = vmul.f32 %v1641_v33, %v259_v24  ;;  %vm311_vm10 = vweird.f32 %v1641_v33  ;;  %v298_v26 = vsel %vm2147_vm11, %v1639_v23, %v294_v39 }
 0x158   :  { %vm312_vm1 = vmor %vm310_vm14, %vm311_vm10  ;;  %v303_v1 = vsel %vm300_vm3, %v302_v47, %v298_v26  ;;  %v603_v47 = vld [vmem:[%s2442_s6 + $0x40] sm:$0xff] }
 0x159   :  { %v307_v38 = vsub.f32 1.0, %v306_v35  ;;  %v322_v9 = vmul.f32 %v303_v1, %v2113_v2  ;;  %v596_v2 = vld [vmem:[%s2442_s6 + $0x8] sm:$0xff] }
 0x15b   :  { %v308_v45 = vmul.f32 %v1641_v33, %v307_v38  ;;  %v771_v38 = vpop.permute.xlu1 %770 }
 0x15d   :  { %v309_v53 = vadd.f32 %v1641_v33, %v308_v45 }
 0x15f   :  { %v313_v40 = vsel %vm312_vm1, %v1641_v33, %v309_v53 }
 0x160   :  { %v318_v0 = vsel %vm315_vm2, %v317_v60, %v313_v40 }
 0x161   :  { %v323_v3 = vmul.f32 %v318_v0, %v2118_v11  ;;  %v595_v11 = vld [vmem:[%s2442_s6] sm:$0xff] }
 0x163   :  { %655 = vmatpush.msra.mxu1 %v323_v3  ;;  %1573 = vmatpush.msra.mxu3 %v323_v3 }
 0x165   :  { %656 = vmatpush.msra.mxu1 %v322_v9  ;;  %1574 = vmatpush.msra.mxu3 %v322_v9  ;;  %v841_v9 = vpop.permute.xlu2 %840 }
 0x167   :  { %657 = vmatpush.msra.mxu1 %v321_v14  ;;  %1575 = vmatpush.msra.mxu3 %v321_v14 }
 0x169   :  { %658 = vmatpush.msra.mxu1 %v320_v10  ;;  %1576 = vmatpush.msra.mxu3 %v320_v10 }
 0x16a   :  { %1516 = vmatmul.msk.f32.vlgmr.msra.gmra.mxu1 %vm202_vm0, %v595_v11  ;;  %1524 = vmatmul.msk.f32.vlgmr.msra.gmra.mxu3 %vm202_vm0, %v603_v47  ;;  %v606_v11 = vld [vmem:[%s2442_s6 + $0x58] sm:$0xff] }
 0x172   :  { %1517 = vmatmul.msk.f32.gmra.mxu1 %vm202_vm0, %v596_v2  ;;  %1525 = vmatmul.msk.f32.gmra.mxu3 %vm202_vm0, %v604_v34  ;;  %v865_v2 = vpop.permute.xlu1 %864 }
 0x17a   :  { %1518 = vmatmul.msk.f32.gmra.mxu1 %vm202_vm0, %v597_v63  ;;  %1526 = vmatmul.msk.f32.gmra.mxu3 %vm202_vm0, %v605_v7 }
 0x182   :  { %1519 = vmatmul.msk.f32.gmra.mxu1 %vm202_vm0, %v598_v49  ;;  %v831_v49 = vpop.permute.xlu2 %830  ;;  %1527 = vmatmul.msk.f32.gmra.mxu3 %vm202_vm0, %v606_v11 }
 0x187   :  { %v741_v15 = vpop.f32.mrf.mxu2 }
 0x18f   :  { %v744_v17 = vpop.f32.mrf.mxu2 }
 0x197   :  { %v747_v19 = vpop.f32.mrf.mxu2 }
 0x19f   :  { %v750_v29 = vpop.f32.mrf.mxu2 }
 0x1e7   :  { %v660_v16 = vpop.f32.mrf.mxu1 }
 0x1e8   :  { %v742_v23 = vadd.f32 %v741_v15, %v660_v16  ;;  %v860_v15 = vpop.permute.xlu0 %859 }
 0x1ea   :  { %v2195_v28 = vadd.f32 %v756_v21, %v742_v23 }
 0x1ec   :  { %v787_v33 = vmul.f32 %v2195_v28, %v2195_v28 }
 0x1ef   :  { %v663_v18 = vpop.f32.mrf.mxu1 }
 0x1f0   :  { %v745_v20 = vadd.f32 %v744_v17, %v663_v18 }
 0x1f2   :  { %v2193_v27 = vadd.f32 %v761_v25, %v745_v20 }
 0x1f4   :  { %v788_v31 = vmul.f32 %v2193_v27, %v2193_v27  ;;  %v777_v35 = vadd.f32 %v2193_v27, %v2195_v28 }
 0x1f6   :  { %v791_v39 = vadd.f32 %v788_v31, %v787_v33  ;;  %v826_v31 = vpop.permute.xlu1 %825 }
 0x1f7   :  { %v666_v22 = vpop.f32.mrf.mxu1 }
 0x1f8   :  { %v748_v24 = vadd.f32 %v747_v19, %v666_v22 }
 0x1fa   :  { %v2197_v30 = vadd.f32 %v766_v59, %v748_v24 }
 0x1fc   :  { %v789_v36 = vmul.f32 %v2197_v30, %v2197_v30  ;;  %v778_v41 = vadd.f32 %v777_v35, %v2197_v30 }
 0x1fe   :  { %v792_v43 = vadd.f32 %v791_v39, %v789_v36 }
 0x1ff   :  { %v669_v32 = vpop.f32.mrf.mxu1 }
 0x200   :  { %v751_v37 = vadd.f32 %v750_v29, %v669_v32 }
 0x202   :  { %v776_v42 = vadd.f32 %v771_v38, %v751_v37  ;;  %v855_v37 = vpop.permute.xlu2 %854  ;;  %v850_v38 = vpop.permute.xlu0 %849 }
 0x204   :  { %v779_v44 = vadd.f32 %v778_v41, %v776_v42  ;;  %v790_v45 = vmul.f32 %v776_v42, %v776_v42 }
 0x206   :  { %v780_v46 = vrot.slane %v779_v44, 4  ;;  %v793_v48 = vadd.f32 %v792_v43, %v790_v45 }
 0x208   :  { %v781_v8 = vadd.f32 %v780_v46, %v779_v44  ;;  %v794_v51 = vrot.slane %v793_v48, 4 }
 0x20a   :  { %v782_v52 = vrot.slane %v781_v8, 2  ;;  %v795_v53 = vadd.f32 %v794_v51, %v793_v48  ;;  %v599_v51 = vld [vmem:[%s2442_s6 + $0x20] sm:$0xff] }
 0x20b   :  { %1520 = vmatmul.msk.f32.gmra.mxu1 %vm202_vm0, %v599_v51 }
 0x20c   :  { %v783_v26 = vadd.f32 %v782_v52, %v781_v8  ;;  %v796_v57 = vrot.slane %v795_v53, 2 }
 0x20e   :  { %v784_v58 = vrot.slane %v783_v26, 1  ;;  %v797_v60 = vadd.f32 %v796_v57, %v795_v53 }
 0x210   :  { %v785_v61 = vadd.f32 %v784_v58, %v783_v26  ;;  %v798_v62 = vrot.slane %v797_v60, 1 }
 0x212   :  { %v786_v40 = vmul.f32 %v785_v61, %v2044_v12  ;;  %v799_v56 = vadd.f32 %v798_v62, %v797_v60  ;;  %v600_v62 = vld [vmem:[%s2442_s6 + $0x28] sm:$0xff] }
 0x213   :  { %1521 = vmatmul.msk.f32.gmra.mxu1 %vm202_vm0, %v600_v62 }
 0x214   :  { %v800_v0 = vmul.f32 %v799_v56, %v2044_v12  ;;  %v801_v1 = vmul.f32 %v786_v40, %v786_v40  ;;  %v807_v19 = vsub.f32 %v776_v42, %v786_v40  ;;  %v806_v20 = vsub.f32 %v2197_v30, %v786_v40 }
 0x215   :  { %v805_v21 = vsub.f32 %v2193_v27, %v786_v40  ;;  %v804_v22 = vsub.f32 %v2195_v28, %v786_v40 }
 0x216   :  { %v802_v3 = vsub.f32 %v800_v0, %v801_v1 }
 0x218   :  { %v803_v4 = vmax.f32 %v802_v3, 0.0 }
 0x21a   :  { %v808_v5 = vadd.f32 1e-05, %v803_v4 }
 0x21c   :  { %1642 = vrsqrt.f32 %v808_v5  ;;  %vm815_vm8 = vweird.f32 %v808_v5 }
 0x222   :  { %v1643_v14 = vpop.eup %1642 }
 0x223   :  { %v810_v10 = vmul.f32 %v1643_v14, %v808_v5  ;;  %vm816_vm6 = vweird.f32 %v1643_v14 }
 0x224   :  { %vm817_vm9 = vmor %vm815_vm8, %vm816_vm6 }
 0x225   :  { %v811_v63 = vmul.f32 %v1643_v14, %v810_v10 }
 0x227   :  { %v812_v16 = vmul.f32 0.5, %v811_v63 }
 0x229   :  { %v813_v17 = vsub.f32 1.5, %v812_v16 }
 0x22b   :  { %v814_v18 = vmul.f32 %v1643_v14, %v813_v17  ;;  %v601_v17 = vld [vmem:[%s2442_s6 + $0x30] sm:$0xff] }
 0x22c   :  { %1522 = vmatmul.msk.f32.gmra.mxu1 %vm202_vm0, %v601_v17 }
 0x22d   :  { %v818_v23 = vsel %vm817_vm9, %v1643_v14, %v814_v18 }
 0x22e   :  { %v822_v24 = vmul.f32 %v818_v23, %v807_v19  ;;  %v821_v25 = vmul.f32 %v818_v23, %v806_v20  ;;  %v820_v59 = vmul.f32 %v818_v23, %v805_v21  ;;  %v819_v29 = vmul.f32 %v818_v23, %v804_v22 }
 0x230   :  { %v846_v32 = vmul.f32 %v841_v9, %v822_v24  ;;  %v845_v33 = vmul.f32 %v836_v13, %v821_v25  ;;  %v844_v35 = vmul.f32 %v831_v49, %v820_v59  ;;  %v843_v36 = vmul.f32 %v826_v31, %v819_v29 }
 0x232   :  { %v2229_v39 = vadd.f32 %v865_v2, %v846_v32  ;;  %v2231_v41 = vadd.f32 %v860_v15, %v845_v33  ;;  %v2233_v30 = vadd.f32 %v855_v37, %v844_v35  ;;  %v2235_v27 = vadd.f32 %v850_v38, %v843_v36 }
 0x234   :  { %v874_v28 = vsub.f32 0.0, %v2229_v39  ;;  %v873_v42 = vsub.f32 0.0, %v2231_v41  ;;  %v872_v43 = vsub.f32 0.0, %v2233_v30  ;;  %v871_v44 = vsub.f32 0.0, %v2235_v27 }
 0x236   :  { %v881_v45 = vmul.f32 1.442695, %v874_v28  ;;  %v879_v46 = vmul.f32 1.442695, %v873_v42  ;;  %v877_v48 = vmul.f32 1.442695, %v872_v43 }
 0x237   :  { %v875_v8 = vmul.f32 1.442695, %v871_v44 }
 0x238   :  { %1644 = vpow2.f32 %v881_v45 }
 0x239   :  { %1646 = vpow2.f32 %v879_v46 }
 0x23a   :  { %1648 = vpow2.f32 %v877_v48 }
 0x23b   :  { %1650 = vpow2.f32 %v875_v8  ;;  %v602_v8 = vld [vmem:[%s2442_s6 + $0x38] sm:$0xff] }
 0x23c   :  { %1523 = vmatmul.msk.f32.gmra.mxu1 %vm202_vm0, %v602_v8 }
 0x23e   :  { %v1645_v52 = vpop.eup %1644 }
 0x23f   :  { %v1647_v53 = vpop.eup %1646  ;;  %v886_v26 = vadd.f32 1.0, %v1645_v52 }
 0x240   :  { %v1649_v57 = vpop.eup %1648  ;;  %v885_v58 = vadd.f32 1.0, %v1647_v53 }
 0x241   :  { %v1651_v60 = vpop.eup %1650  ;;  %1652 = vrcp.f32 %v886_v26  ;;  %v884_v47 = vadd.f32 1.0, %v1649_v57  ;;  %v941_v56 = vand.u32 2147483647, %v886_v26  ;;  %v943_v34 = vand.u32 2147483648, %v886_v26 }
 0x242   :  { %1654 = vrcp.f32 %v885_v58  ;;  %v2245_v61 = vadd.f32 1.0, %v1651_v60  ;;  %v926_v4 = vand.u32 2147483647, %v885_v58  ;;  %v928_v7 = vand.u32 2147483648, %v885_v58 }
 0x243   :  { %1656 = vrcp.f32 %v884_v47  ;;  %vm937_vm10 = vweird.f32 %v886_v26  ;;  %vm2252_vm11 = vcmp.eq.f32.partialorder %v941_v56, 8.507059e+37  ;;  %vm922_vm12 = vweird.f32 %v885_v58 }
 0x244   :  { %1658 = vrcp.f32 %v2245_v61  ;;  %v944_v2 = vor.u32 1.1754944e-38, %v943_v34  ;;  %vm2256_vm15 = vcmp.eq.f32.partialorder %v926_v4, 8.507059e+37  ;;  %v929_v19 = vor.u32 1.1754944e-38, %v928_v7 }
 0x245   :  { %v911_v21 = vand.u32 2147483647, %v884_v47  ;;  %v913_v23 = vand.u32 2147483648, %v884_v47  ;;  %v896_v25 = vand.u32 2147483647, %v2245_v61  ;;  %v898_v31 = vand.u32 2147483648, %v2245_v61 }
 0x246   :  { %vm907_vm5 = vweird.f32 %v884_v47  ;;  %vm892_vm6 = vweird.f32 %v2245_v61 }
 0x247   :  { %v1653_v40 = vpop.eup %1652  ;;  %v914_v42 = vor.u32 1.1754944e-38, %v913_v23  ;;  %vm912_vm8 = vcmp.eq.f32.partialorder %v911_v21, 8.507059e+37  ;;  %v899_v46 = vor.u32 1.1754944e-38, %v898_v31 }
 0x248   :  { %v1655_v0 = vpop.eup %1654  ;;  %v933_v1 = vmul.f32 %v1653_v40, %v886_v26  ;;  %vm938_vm13 = vweird.f32 %v1653_v40 }
 0x249   :  { %v918_v3 = vmul.f32 %v1655_v0, %v885_v58  ;;  %v1657_v9 = vpop.eup %1656  ;;  %vm923_vm14 = vweird.f32 %v1655_v0  ;;  %vm939_vm1 = vmor %vm937_vm10, %vm938_vm13  ;;  %vm897_vm10 = vcmp.eq.f32.partialorder %v896_v25, 8.507059e+37 }
 0x24a   :  { %v934_v5 = vsub.f32 1.0, %v933_v1  ;;  %v1659_v10 = vpop.eup %1658  ;;  %v903_v63 = vmul.f32 %v1657_v9, %v884_v47  ;;  %vm924_vm2 = vmor %vm922_vm12, %vm923_vm14  ;;  %vm908_vm3 = vweird.f32 %v1657_v9  ;;  %v1017_v1 = vpop.permute.xlu1 %1016 }
 0x24b   :  { %v919_v14 = vsub.f32 1.0, %v918_v3  ;;  %v888_v16 = vmul.f32 %v1659_v10, %v2245_v61  ;;  %vm893_vm4 = vweird.f32 %v1659_v10  ;;  %vm909_vm7 = vmor %vm907_vm5, %vm908_vm3 }
 0x24c   :  { %v935_v11 = vmul.f32 %v1653_v40, %v934_v5  ;;  %v904_v20 = vsub.f32 1.0, %v903_v63  ;;  %vm894_vm9 = vmor %vm892_vm6, %vm893_vm4  ;;  %v1022_v5 = vpop.permute.xlu2 %1021 }
 0x24d   :  { %v920_v49 = vmul.f32 %v1655_v0, %v919_v14  ;;  %v889_v24 = vsub.f32 1.0, %v888_v16 }
 0x24e   :  { %v936_v18 = vadd.f32 %v1653_v40, %v935_v11  ;;  %v905_v29 = vmul.f32 %v1657_v9, %v904_v20 }
 0x24f   :  { %v921_v22 = vadd.f32 %v1655_v0, %v920_v49  ;;  %v890_v35 = vmul.f32 %v1659_v10, %v889_v24 }
 0x250   :  { %v940_v59 = vsel %vm939_vm1, %v1653_v40, %v936_v18  ;;  %v906_v38 = vadd.f32 %v1657_v9, %v905_v29 }
 0x251   :  { %v945_v32 = vsel %vm2252_vm11, %v944_v2, %v940_v59  ;;  %v925_v33 = vsel %vm924_vm2, %v1655_v0, %v921_v22  ;;  %v891_v43 = vadd.f32 %v1659_v10, %v890_v35 }
 0x252   :  { %v950_v36 = vmul.f32 %v945_v32, %v2229_v39  ;;  %v930_v37 = vsel %vm2256_vm15, %v929_v19, %v925_v33  ;;  %v910_v45 = vsel %vm909_vm7, %v1657_v9, %v906_v38  ;;  %v1027_v9 = vpop.permute.xlu0 %1026  ;;  %v1032_v17 = vpop.permute.xlu1 %1031 }
 0x253   :  { %v949_v28 = vmul.f32 %v930_v37, %v2231_v41  ;;  %v915_v39 = vsel %vm912_vm8, %v914_v42, %v910_v45  ;;  %v895_v48 = vsel %vm894_vm9, %v1659_v10, %v891_v43 }
 0x254   :  { %v2278_v44 = vadd.f32 %v950_v36, %v2092_v50  ;;  %v948_v51 = vmul.f32 %v915_v39, %v2233_v30  ;;  %v900_v50 = vsel %vm897_vm10, %v899_v46, %v895_v48  ;;  %v1545_v30 = vld [vmem:[%s2441_s5 + $0x28] sm:$0xff] }
 0x255   :  { %v2285_v41 = vadd.f32 %v949_v28, %v2096_v54  ;;  %v947_v52 = vmul.f32 %v900_v50, %v2235_v27  ;;  %v1544_v54 = vld [vmem:[%s2441_s5 + $0x20] sm:$0xff]  ;;  %v2315_v27 = vpop.f32.mrf.mxu3 }
 0x256   :  { %997 = vmatpush.msrb.mxu3 %v2278_v44  ;;  %v2292_v53 = vadd.f32 %v948_v51, %v2100_v55  ;;  %v1546_v55 = vld [vmem:[%s2441_s5 + $0x30] sm:$0xff]  ;;  %v1102_v51 = vpop.permute.xlu2 %1101 }
 0x257   :  { %v2296_v26 = vadd.f32 %v947_v52, %v2104_v6  ;;  %v1547_v6 = vld [vmem:[%s2441_s5 + $0x38] sm:$0xff] }
 0x258   :  { %998 = vmatpush.msrb.mxu3 %v2285_v41 }
 0x25a   :  { %999 = vmatpush.msrb.mxu3 %v2292_v53  ;;  %v1097_v50 = vpop.permute.xlu0 %1096 }
 0x25c   :  { %1000 = vmatpush.msrb.mxu3 %v2296_v26 }
 0x25d   :  { %1548 = vmatmul.msk.f32.vlgmr.msrb.gmra.mxu3 %vm202_vm0, %v1544_v54  ;;  %v2317_v57 = vpop.f32.mrf.mxu3 }
 0x265   :  { %1549 = vmatmul.msk.f32.gmra.mxu3 %vm202_vm0, %v1545_v30  ;;  %v2319_v58 = vpop.f32.mrf.mxu3  ;;  %v1126_v30 = vpop.permute.xlu1 %1125 }
 0x26d   :  { %1550 = vmatmul.msk.f32.gmra.mxu3 %vm202_vm0, %v1546_v55  ;;  %v2321_v60 = vpop.f32.mrf.mxu3 }
 0x275   :  { %1551 = vmatmul.msk.f32.gmra.mxu3 %vm202_vm0, %v1547_v6  ;;  %v1092_v6 = vpop.permute.xlu2 %1091 }
 0x288   :  { %v672_v47 = vpop.f32.mrf.mxu1 }
 0x290   :  { %v675_v62 = vpop.f32.mrf.mxu1 }
 0x2a9   :  { %v678_v56 = vpop.f32.mrf.mxu1 }
 0x2b9   :  { %v681_v10 = vpop.f32.mrf.mxu1 }
 0x2e0   :  { %v1002_v61 = vpop.f32.mrf.mxu3 }
 0x2e1   :  { %v1003_v3 = vadd.f32 %v1002_v61, %v672_v47  ;;  %v1121_v47 = vpop.permute.xlu0 %1120 }
 0x2e3   :  { %v1034_v13 = vadd.f32 %v1017_v1, %v1003_v3 }
 0x2e5   :  { %v1048_v63 = vmul.f32 %v1034_v13, %v1034_v13 }
 0x2e8   :  { %v1005_v40 = vpop.f32.mrf.mxu3 }
 0x2e9   :  { %v1006_v0 = vadd.f32 %v1005_v40, %v675_v62 }
 0x2eb   :  { %v1035_v7 = vadd.f32 %v1022_v5, %v1006_v0 }
 0x2ed   :  { %v1049_v11 = vmul.f32 %v1035_v7, %v1035_v7  ;;  %v1038_v49 = vadd.f32 %v1035_v7, %v1034_v13 }
 0x2ef   :  { %v1052_v18 = vadd.f32 %v1049_v11, %v1048_v63  ;;  %v1087_v11 = vpop.permute.xlu1 %1086 }
 0x2f0   :  { %v1008_v34 = vpop.f32.mrf.mxu3 }
 0x2f1   :  { %v1009_v4 = vadd.f32 %v1008_v34, %v678_v56 }
 0x2f3   :  { %v1036_v14 = vadd.f32 %v1027_v9, %v1009_v4 }
 0x2f5   :  { %v1050_v15 = vmul.f32 %v1036_v14, %v1036_v14  ;;  %v1039_v19 = vadd.f32 %v1038_v49, %v1036_v14 }
 0x2f7   :  { %v1053_v21 = vadd.f32 %v1052_v18, %v1050_v15 }
 0x2f8   :  { %v1011_v2 = vpop.f32.mrf.mxu3 }
 0x2f9   :  { %v1012_v16 = vadd.f32 %v1011_v2, %v681_v10 }
 0x2fb   :  { %v1037_v20 = vadd.f32 %v1032_v17, %v1012_v16  ;;  %v1116_v16 = vpop.permute.xlu2 %1115  ;;  %v1111_v17 = vpop.permute.xlu0 %1110 }
 0x2fd   :  { %v1040_v22 = vadd.f32 %v1039_v19, %v1037_v20  ;;  %v1051_v23 = vmul.f32 %v1037_v20, %v1037_v20 }
 0x2ff   :  { %v1041_v24 = vrot.slane %v1040_v22, 4  ;;  %v1054_v25 = vadd.f32 %v1053_v21, %v1051_v23 }
 0x301   :  { %v1042_v59 = vadd.f32 %v1041_v24, %v1040_v22  ;;  %v1055_v29 = vrot.slane %v1054_v25, 4 }
 0x303   :  { %v1043_v31 = vrot.slane %v1042_v59, 2  ;;  %v1056_v32 = vadd.f32 %v1055_v29, %v1054_v25 }
 0x305   :  { %v1044_v33 = vadd.f32 %v1043_v31, %v1042_v59  ;;  %v1057_v35 = vrot.slane %v1056_v32, 2 }
 0x307   :  { %v1045_v36 = vrot.slane %v1044_v33, 1  ;;  %v1058_v37 = vadd.f32 %v1057_v35, %v1056_v32 }
 0x309   :  { %v1046_v38 = vadd.f32 %v1045_v36, %v1044_v33  ;;  %v1059_v28 = vrot.slane %v1058_v37, 1 }
 0x30b   :  { %v1047_v42 = vmul.f32 %v1046_v38, %v2044_v12  ;;  %v1060_v43 = vadd.f32 %v1059_v28, %v1058_v37 }
 0x30d   :  { %v1061_v45 = vmul.f32 %v1060_v43, %v2044_v12  ;;  %v1062_v46 = vmul.f32 %v1047_v42, %v1047_v42  ;;  %v1068_v56 = vsub.f32 %v1037_v20, %v1047_v42  ;;  %v1067_v0 = vsub.f32 %v1036_v14, %v1047_v42 }
 0x30e   :  { %v1066_v1 = vsub.f32 %v1035_v7, %v1047_v42  ;;  %v1065_v34 = vsub.f32 %v1034_v13, %v1047_v42 }
 0x30f   :  { %v1063_v39 = vsub.f32 %v1061_v45, %v1062_v46 }
 0x311   :  { %v1064_v48 = vmax.f32 %v1063_v39, 0.0 }
 0x313   :  { %v1069_v8 = vadd.f32 1e-05, %v1064_v48 }
 0x315   :  { %1660 = vrsqrt.f32 %v1069_v8  ;;  %vm1076_vm12 = vweird.f32 %v1069_v8 }
 0x31b   :  { %v1661_v52 = vpop.eup %1660 }
 0x31c   :  { %v1071_v54 = vmul.f32 %v1661_v52, %v1069_v8  ;;  %vm1077_vm11 = vweird.f32 %v1661_v52 }
 0x31d   :  { %vm1078_vm13 = vmor %vm1076_vm12, %vm1077_vm11 }
 0x31e   :  { %v1072_v55 = vmul.f32 %v1661_v52, %v1071_v54 }
 0x320   :  { %v1073_v61 = vmul.f32 0.5, %v1072_v55 }
 0x322   :  { %v1074_v62 = vsub.f32 1.5, %v1073_v61 }
 0x324   :  { %v1075_v40 = vmul.f32 %v1661_v52, %v1074_v62 }
 0x326   :  { %v1079_v3 = vsel %vm1078_vm13, %v1661_v52, %v1075_v40 }
 0x327   :  { %v1083_v4 = vmul.f32 %v1079_v3, %v1068_v56  ;;  %v1082_v5 = vmul.f32 %v1079_v3, %v1067_v0  ;;  %v1081_v9 = vmul.f32 %v1079_v3, %v1066_v1  ;;  %v1080_v10 = vmul.f32 %v1079_v3, %v1065_v34 }
 0x329   :  { %v1107_v2 = vmul.f32 %v1102_v51, %v1083_v4  ;;  %v1106_v63 = vmul.f32 %v1097_v50, %v1082_v5  ;;  %v1105_v49 = vmul.f32 %v1092_v6, %v1081_v9  ;;  %v1104_v15 = vmul.f32 %v1087_v11, %v1080_v10 }
 0x32b   :  { %v2325_v18 = vadd.f32 %v1126_v30, %v1107_v2  ;;  %v2327_v19 = vadd.f32 %v1121_v47, %v1106_v63  ;;  %v2329_v20 = vadd.f32 %v1116_v16, %v1105_v49  ;;  %v2331_v7 = vadd.f32 %v1111_v17, %v1104_v15 }
 0x32d   :  { %v1135_v13 = vsub.f32 0.0, %v2325_v18  ;;  %v1134_v14 = vsub.f32 0.0, %v2327_v19  ;;  %v1133_v21 = vsub.f32 0.0, %v2329_v20  ;;  %v1132_v22 = vsub.f32 0.0, %v2331_v7 }
 0x32f   :  { %v1142_v23 = vmul.f32 1.442695, %v1135_v13  ;;  %v1140_v24 = vmul.f32 1.442695, %v1134_v14  ;;  %v1138_v25 = vmul.f32 1.442695, %v1133_v21 }
 0x330   :  { %v1136_v59 = vmul.f32 1.442695, %v1132_v22 }
 0x331   :  { %1662 = vpow2.f32 %v1142_v23 }
 0x332   :  { %1664 = vpow2.f32 %v1140_v24 }
 0x333   :  { %1666 = vpow2.f32 %v1138_v25 }
 0x334   :  { %1668 = vpow2.f32 %v1136_v59 }
 0x337   :  { %v1663_v29 = vpop.eup %1662 }
 0x338   :  { %v1665_v31 = vpop.eup %1664  ;;  %v1147_v32 = vadd.f32 1.0, %v1663_v29 }
 0x339   :  { %v1667_v33 = vpop.eup %1666  ;;  %v1146_v35 = vadd.f32 1.0, %v1665_v31 }
 0x33a   :  { %v1669_v36 = vpop.eup %1668  ;;  %1670 = vrcp.f32 %v1147_v32  ;;  %v1145_v37 = vadd.f32 1.0, %v1667_v33  ;;  %v1202_v42 = vand.u32 2147483647, %v1147_v32  ;;  %v1204_v46 = vand.u32 2147483648, %v1147_v32 }
 0x33b   :  { %1672 = vrcp.f32 %v1146_v35  ;;  %v1144_v38 = vadd.f32 1.0, %v1669_v36  ;;  %v1187_v48 = vand.u32 2147483647, %v1146_v35  ;;  %v1189_v51 = vand.u32 2147483648, %v1146_v35 }
 0x33c   :  { %1674 = vrcp.f32 %v1145_v37  ;;  %vm1198_vm14 = vweird.f32 %v1147_v32  ;;  %vm2337_vm15 = vcmp.eq.f32.partialorder %v1202_v42, 8.507059e+37  ;;  %vm1183_vm1 = vweird.f32 %v1146_v35 }
 0x33d   :  { %1676 = vrcp.f32 %v1144_v38  ;;  %v1205_v6 = vor.u32 1.1754944e-38, %v1204_v46  ;;  %vm2341_vm4 = vcmp.eq.f32.partialorder %v1187_v48, 8.507059e+37  ;;  %v1190_v0 = vor.u32 1.1754944e-38, %v1189_v51  ;;  %v1288_v46 = vpop.permute.xlu0 %1287 }
 0x33e   :  { %v1172_v34 = vand.u32 2147483647, %v1145_v37  ;;  %v1174_v4 = vand.u32 2147483648, %v1145_v37  ;;  %v1157_v9 = vand.u32 2147483647, %v1144_v38  ;;  %v1159_v2 = vand.u32 2147483648, %v1144_v38 }
 0x33f   :  { %vm1168_vm9 = vweird.f32 %v1145_v37  ;;  %vm1153_vm11 = vweird.f32 %v1144_v38 }
 0x340   :  { %v1671_v28 = vpop.eup %1670  ;;  %v1175_v21 = vor.u32 1.1754944e-38, %v1174_v4  ;;  %vm1173_vm12 = vcmp.eq.f32.partialorder %v1172_v34, 8.507059e+37  ;;  %v1160_v25 = vor.u32 1.1754944e-38, %v1159_v2 }
 0x341   :  { %v1673_v43 = vpop.eup %1672  ;;  %v1194_v45 = vmul.f32 %v1671_v28, %v1147_v32  ;;  %vm1199_vm2 = vweird.f32 %v1671_v28 }
 0x342   :  { %v1179_v39 = vmul.f32 %v1673_v43, %v1146_v35  ;;  %v1675_v50 = vpop.eup %1674  ;;  %vm1184_vm3 = vweird.f32 %v1673_v43  ;;  %vm1200_vm5 = vmor %vm1198_vm14, %vm1199_vm2  ;;  %vm1158_vm14 = vcmp.eq.f32.partialorder %v1157_v9, 8.507059e+37 }
 0x343   :  { %v1195_v8 = vsub.f32 1.0, %v1194_v45  ;;  %v1677_v30 = vpop.eup %1676  ;;  %v1164_v47 = vmul.f32 %v1675_v50, %v1145_v37  ;;  %vm1185_vm7 = vmor %vm1183_vm1, %vm1184_vm3  ;;  %vm1169_vm6 = vweird.f32 %v1675_v50  ;;  %v1278_v37 = vpop.permute.xlu1 %1277 }
 0x344   :  { %v1180_v54 = vsub.f32 1.0, %v1179_v39  ;;  %v1149_v40 = vmul.f32 %v1677_v30, %v1144_v38  ;;  %vm1154_vm8 = vweird.f32 %v1677_v30  ;;  %vm1170_vm10 = vmor %vm1168_vm9, %vm1169_vm6 }
 0x345   :  { %v1196_v55 = vmul.f32 %v1671_v28, %v1195_v8  ;;  %v1165_v1 = vsub.f32 1.0, %v1164_v47  ;;  %vm1155_vm13 = vmor %vm1153_vm11, %vm1154_vm8 }
 0x346   :  { %v1181_v61 = vmul.f32 %v1673_v43, %v1180_v54  ;;  %v1150_v5 = vsub.f32 1.0, %v1149_v40 }
 0x347   :  { %v1197_v56 = vadd.f32 %v1671_v28, %v1196_v55  ;;  %v1166_v11 = vmul.f32 %v1675_v50, %v1165_v1 }
 0x348   :  { %v1182_v3 = vadd.f32 %v1673_v43, %v1181_v61  ;;  %v1151_v15 = vmul.f32 %v1677_v30, %v1150_v5 }
 0x349   :  { %v1201_v10 = vsel %vm1200_vm5, %v1671_v28, %v1197_v56  ;;  %v1167_v13 = vadd.f32 %v1675_v50, %v1166_v11 }
 0x34a   :  { %v1206_v63 = vsel %vm2337_vm15, %v1205_v6, %v1201_v10  ;;  %v1186_v49 = vsel %vm1185_vm7, %v1673_v43, %v1182_v3  ;;  %v1152_v22 = vadd.f32 %v1677_v30, %v1151_v15  ;;  %v1283_v43 = vpop.permute.xlu2 %1282 }
 0x34b   :  { %v1211_v16 = vmul.f32 %v1206_v63, %v2325_v18  ;;  %v1191_v17 = vsel %vm2341_vm4, %v1190_v0, %v1186_v49  ;;  %v1171_v24 = vsel %vm1170_vm10, %v1675_v50, %v1167_v13  ;;  %v1293_v55 = vpop.permute.xlu1 %1292 }
 0x34c   :  { %v1210_v14 = vmul.f32 %v1191_v17, %v2327_v19  ;;  %v1176_v59 = vsel %vm1173_vm12, %v1175_v21, %v1171_v24  ;;  %v1156_v18 = vsel %vm1155_vm13, %v1677_v30, %v1152_v22 }
 0x34d   :  { %v2354_v23 = vadd.f32 %v1211_v16, %v2278_v44  ;;  %v1209_v19 = vmul.f32 %v1176_v59, %v2329_v20  ;;  %v1161_v31 = vsel %vm1158_vm14, %v1160_v25, %v1156_v18  ;;  %v1565_v20 = vld [vmem:[%s2441_s5 + $0x48] sm:$0xff] }
 0x34e   :  { %v2358_v29 = vadd.f32 %v1210_v14, %v2285_v41  ;;  %v1208_v32 = vmul.f32 %v1161_v31, %v2331_v7  ;;  %v1564_v41 = vld [vmem:[%s2441_s5 + $0x40] sm:$0xff]  ;;  %v1358_v14 = vpop.permute.xlu0 %1357 }
 0x34f   :  { %1258 = vmatpush.msrb.mxu0 %v2354_v23  ;;  %v2364_v44 = vadd.f32 %v1209_v19, %v2292_v53  ;;  %v1566_v53 = vld [vmem:[%s2441_s5 + $0x50] sm:$0xff] }
 0x350   :  { %v2368_v33 = vadd.f32 %v1208_v32, %v2296_v26  ;;  %v1567_v26 = vld [vmem:[%s2441_s5 + $0x58] sm:$0xff] }
 0x351   :  { %1259 = vmatpush.msrb.mxu0 %v2358_v29 }
 0x352   :  { %v1363_v13 = vpop.permute.xlu2 %1362 }
 0x353   :  { %1260 = vmatpush.msrb.mxu0 %v2364_v44  ;;  %v1387_v24 = vpop.permute.xlu1 %1386 }
 0x355   :  { %1261 = vmatpush.msrb.mxu0 %v2368_v33 }
 0x356   :  { %1568 = vmatmul.msk.f32.vlgmr.msrb.gmra.mxu0 %vm202_vm0, %v1564_v41  ;;  %v1382_v18 = vpop.permute.xlu0 %1381 }
 0x35a   :  { %v1353_v59 = vpop.permute.xlu2 %1352 }
 0x35e   :  { %1569 = vmatmul.msk.f32.gmra.mxu0 %vm202_vm0, %v1565_v20 }
 0x366   :  { %1570 = vmatmul.msk.f32.gmra.mxu0 %vm202_vm0, %v1566_v53 }
 0x36e   :  { %1571 = vmatmul.msk.f32.gmra.mxu0 %vm202_vm0, %v1567_v26 }
 0x3d3   :  { %v1263_v7 = vpop.f32.mrf.mxu0 }
 0x3d4   :  { %v1264_v28 = vadd.f32 %v1263_v7, %v2315_v27 }
 0x3d6   :  { %v1295_v39 = vadd.f32 %v1278_v37, %v1264_v28 }
 0x3d8   :  { %v1309_v50 = vmul.f32 %v1295_v39, %v1295_v39 }
 0x3db   :  { %v1266_v35 = vpop.f32.mrf.mxu0 }
 0x3dc   :  { %v1267_v36 = vadd.f32 %v1266_v35, %v2317_v57 }
 0x3de   :  { %v1296_v45 = vadd.f32 %v1283_v43, %v1267_v36 }
 0x3e0   :  { %v1310_v8 = vmul.f32 %v1296_v45, %v1296_v45  ;;  %v1299_v52 = vadd.f32 %v1296_v45, %v1295_v39 }
 0x3e2   :  { %v1313_v57 = vadd.f32 %v1310_v8, %v1309_v50  ;;  %v1377_v8 = vpop.permute.xlu2 %1376 }
 0x3e3   :  { %v1269_v38 = vpop.f32.mrf.mxu0 }
 0x3e4   :  { %v1270_v42 = vadd.f32 %v1269_v38, %v2319_v58  ;;  %v1348_v38 = vpop.permute.xlu1 %1347 }
 0x3e6   :  { %v1297_v48 = vadd.f32 %v1288_v46, %v1270_v42 }
 0x3e8   :  { %v1311_v54 = vmul.f32 %v1297_v48, %v1297_v48  ;;  %v1300_v6 = vadd.f32 %v1299_v52, %v1297_v48 }
 0x3ea   :  { %v1314_v61 = vadd.f32 %v1313_v57, %v1311_v54 }
 0x3eb   :  { %v1272_v51 = vpop.f32.mrf.mxu0 }
 0x3ec   :  { %v1273_v30 = vadd.f32 %v1272_v51, %v2321_v60  ;;  %v1372_v51 = vpop.permute.xlu0 %1371 }
 0x3ee   :  { %v1298_v47 = vadd.f32 %v1293_v55, %v1273_v30 }
 0x3f0   :  { %v1301_v27 = vadd.f32 %v1300_v6, %v1298_v47  ;;  %v1312_v62 = vmul.f32 %v1298_v47, %v1298_v47 }
 0x3f2   :  { %v1302_v58 = vrot.slane %v1301_v27, 4  ;;  %v1315_v40 = vadd.f32 %v1314_v61, %v1312_v62 }
 0x3f4   :  { %v1303_v56 = vadd.f32 %v1302_v58, %v1301_v27  ;;  %v1316_v0 = vrot.slane %v1315_v40, 4 }
 0x3f6   :  { %v1304_v1 = vrot.slane %v1303_v56, 2  ;;  %v1317_v34 = vadd.f32 %v1316_v0, %v1315_v40 }
 0x3f8   :  { %v1305_v3 = vadd.f32 %v1304_v1, %v1303_v56  ;;  %v1318_v4 = vrot.slane %v1317_v34, 2 }
 0x3fa   :  { %v1306_v5 = vrot.slane %v1305_v3, 1  ;;  %v1319_v9 = vadd.f32 %v1318_v4, %v1317_v34 }
 0x3fc   :  { %v1307_v10 = vadd.f32 %v1306_v5, %v1305_v3  ;;  %v1320_v11 = vrot.slane %v1319_v9, 1 }
 0x3fe   :  { %v1308_v60 = vmul.f32 %v1307_v10, %v2044_v12  ;;  %v1321_v2 = vadd.f32 %v1320_v11, %v1319_v9 }
 0x400   :  { %v1322_v63 = vmul.f32 %v1321_v2, %v2044_v12  ;;  %v1323_v49 = vmul.f32 %v1308_v60, %v1308_v60  ;;  %v1329_v41 = vsub.f32 %v1298_v47, %v1308_v60  ;;  %v1328_v12 = vsub.f32 %v1297_v48, %v1308_v60 }
 0x401   :  { %v1327_v20 = vsub.f32 %v1296_v45, %v1308_v60  ;;  %v1326_v53 = vsub.f32 %v1295_v39, %v1308_v60 }
 0x402   :  { %v1324_v15 = vsub.f32 %v1322_v63, %v1323_v49 }
 0x404   :  { %v1325_v16 = vmax.f32 %v1324_v15, 0.0 }
 0x406   :  { %v1330_v17 = vadd.f32 1e-05, %v1325_v16 }
 0x408   :  { %1678 = vrsqrt.f32 %v1330_v17  ;;  %vm1337_vm1 = vweird.f32 %v1330_v17 }
 0x40e   :  { %v1679_v21 = vpop.eup %1678 }
 0x40f   :  { %v1332_v22 = vmul.f32 %v1679_v21, %v1330_v17  ;;  %vm1338_vm15 = vweird.f32 %v1679_v21 }
 0x410   :  { %vm1339_vm2 = vmor %vm1337_vm1, %vm1338_vm15 }
 0x411   :  { %v1333_v25 = vmul.f32 %v1679_v21, %v1332_v22 }
 0x413   :  { %v1334_v19 = vmul.f32 0.5, %v1333_v25 }
 0x415   :  { %v1335_v31 = vsub.f32 1.5, %v1334_v19 }
 0x417   :  { %v1336_v32 = vmul.f32 %v1679_v21, %v1335_v31 }
 0x419   :  { %v1340_v26 = vsel %vm1339_vm2, %v1679_v21, %v1336_v32 }
 0x41a   :  { %v1344_v7 = vmul.f32 %v1340_v26, %v1329_v41  ;;  %v1343_v35 = vmul.f32 %v1340_v26, %v1328_v12  ;;  %v1342_v36 = vmul.f32 %v1340_v26, %v1327_v20  ;;  %v1341_v37 = vmul.f32 %v1340_v26, %v1326_v53 }
 0x41c   :  { %v1368_v28 = vmul.f32 %v1363_v13, %v1344_v7  ;;  %v1367_v42 = vmul.f32 %v1358_v14, %v1343_v35  ;;  %v1366_v43 = vmul.f32 %v1353_v59, %v1342_v36  ;;  %v1365_v46 = vmul.f32 %v1348_v38, %v1341_v37 }
 0x41e   :  { %v2393_v50 = vadd.f32 %v1387_v24, %v1368_v28  ;;  %v2395_v52 = vadd.f32 %v1382_v18, %v1367_v42  ;;  %v2397_v54 = vadd.f32 %v1377_v8, %v1366_v43  ;;  %v2399_v45 = vadd.f32 %v1372_v51, %v1365_v46 }
 0x420   :  { %v1396_v39 = vsub.f32 0.0, %v2393_v50  ;;  %v1395_v48 = vsub.f32 0.0, %v2395_v52  ;;  %v1394_v30 = vsub.f32 0.0, %v2397_v54  ;;  %v1393_v55 = vsub.f32 0.0, %v2399_v45 }
 0x422   :  { %v1403_v57 = vmul.f32 1.442695, %v1396_v39  ;;  %v1401_v6 = vmul.f32 1.442695, %v1395_v48  ;;  %v1399_v47 = vmul.f32 1.442695, %v1394_v30 }
 0x423   :  { %v1397_v61 = vmul.f32 1.442695, %v1393_v55 }
 0x424   :  { %1680 = vpow2.f32 %v1403_v57 }
 0x425   :  { %1682 = vpow2.f32 %v1401_v6 }
 0x426   :  { %1684 = vpow2.f32 %v1399_v47 }
 0x427   :  { %1686 = vpow2.f32 %v1397_v61  ;;  %v1477_v61 = vld [vmem:[%s2443_s8] sm:$0x3] }
 0x42a   :  { %v1681_v27 = vpop.eup %1680 }
 0x42b   :  { %v1683_v62 = vpop.eup %1682  ;;  %v1408_v58 = vadd.f32 1.0, %v1681_v27  ;;  %v1482_v27 = vpop.permute.xlu1 %1481 }
 0x42c   :  { %v1685_v40 = vpop.eup %1684  ;;  %v1407_v56 = vadd.f32 1.0, %v1683_v62 }
 0x42d   :  { %v1687_v0 = vpop.eup %1686  ;;  %1688 = vrcp.f32 %v1408_v58  ;;  %v1406_v1 = vadd.f32 1.0, %v1685_v40  ;;  %v1463_v4 = vand.u32 2147483647, %v1408_v58  ;;  %v1465_v10 = vand.u32 2147483648, %v1408_v58 }
 0x42e   :  { %1690 = vrcp.f32 %v1407_v56  ;;  %v1405_v34 = vadd.f32 1.0, %v1687_v0  ;;  %v1448_v60 = vand.u32 2147483647, %v1407_v56  ;;  %v1450_v63 = vand.u32 2147483648, %v1407_v56 }
 0x42f   :  { %1692 = vrcp.f32 %v1406_v1  ;;  %vm1459_vm3 = vweird.f32 %v1408_v58  ;;  %vm2405_vm4 = vcmp.eq.f32.partialorder %v1463_v4, 8.507059e+37  ;;  %vm1444_vm5 = vweird.f32 %v1407_v56 }
 0x430   :  { %1694 = vrcp.f32 %v1405_v34  ;;  %v1466_v14 = vor.u32 1.1754944e-38, %v1465_v10  ;;  %vm2409_vm8 = vcmp.eq.f32.partialorder %v1448_v60, 8.507059e+37  ;;  %v1451_v18 = vor.u32 1.1754944e-38, %v1450_v63 }
 0x431   :  { %v1433_v31 = vand.u32 2147483647, %v1406_v1  ;;  %v1435_v41 = vand.u32 2147483648, %v1406_v1  ;;  %v1418_v20 = vand.u32 2147483647, %v1405_v34  ;;  %v1420_v7 = vand.u32 2147483648, %v1405_v34 }
 0x432   :  { %vm1429_vm13 = vweird.f32 %v1406_v1  ;;  %vm1414_vm15 = vweird.f32 %v1405_v34 }
 0x433   :  { %v1689_v3 = vpop.eup %1688  ;;  %v1436_v46 = vor.u32 1.1754944e-38, %v1435_v41  ;;  %vm1434_vm1 = vcmp.eq.f32.partialorder %v1433_v31, 8.507059e+37  ;;  %v1421_v48 = vor.u32 1.1754944e-38, %v1420_v7 }
 0x434   :  { %v1691_v5 = vpop.eup %1690  ;;  %v1455_v9 = vmul.f32 %v1689_v3, %v1408_v58  ;;  %vm1460_vm7 = vweird.f32 %v1689_v3 }
 0x435   :  { %v1440_v11 = vmul.f32 %v1691_v5, %v1407_v56  ;;  %v1693_v49 = vpop.eup %1692  ;;  %vm1445_vm6 = vweird.f32 %v1691_v5  ;;  %vm1461_vm9 = vmor %vm1459_vm3, %vm1460_vm7  ;;  %vm1419_vm3 = vcmp.eq.f32.partialorder %v1418_v20, 8.507059e+37 }
 0x436   :  { %v1456_v2 = vsub.f32 1.0, %v1455_v9  ;;  %v1695_v17 = vpop.eup %1694  ;;  %v1425_v21 = vmul.f32 %v1693_v49, %v1406_v1  ;;  %vm1446_vm10 = vmor %vm1444_vm5, %vm1445_vm6  ;;  %vm1430_vm11 = vweird.f32 %v1693_v49 }
 0x437   :  { %v1441_v16 = vsub.f32 1.0, %v1440_v11  ;;  %v1410_v25 = vmul.f32 %v1695_v17, %v1405_v34  ;;  %vm1415_vm12 = vweird.f32 %v1695_v17  ;;  %vm1431_vm14 = vmor %vm1429_vm13, %vm1430_vm11 }
 0x438   :  { %v1457_v13 = vmul.f32 %v1689_v3, %v1456_v2  ;;  %v1426_v19 = vsub.f32 1.0, %v1425_v21  ;;  %vm1416_vm2 = vmor %vm1414_vm15, %vm1415_vm12 }
 0x439   :  { %v1442_v22 = vmul.f32 %v1691_v5, %v1441_v16  ;;  %v1411_v12 = vsub.f32 1.0, %v1410_v25 }
 0x43a   :  { %v1458_v59 = vadd.f32 %v1689_v3, %v1457_v13  ;;  %v1427_v26 = vmul.f32 %v1693_v49, %v1426_v19 }
 0x43b   :  { %v1443_v32 = vadd.f32 %v1691_v5, %v1442_v22  ;;  %v1412_v37 = vmul.f32 %v1695_v17, %v1411_v12 }
 0x43c   :  { %v1462_v53 = vsel %vm1461_vm9, %v1689_v3, %v1458_v59  ;;  %v1428_v42 = vadd.f32 %v1693_v49, %v1427_v26 }
 0x43d   :  { %v1467_v35 = vsel %vm2405_vm4, %v1466_v14, %v1462_v53  ;;  %v1447_v36 = vsel %vm1446_vm10, %v1691_v5, %v1443_v32  ;;  %v1413_v8 = vadd.f32 %v1695_v17, %v1412_v37 }
 0x43e   :  { %v1472_v38 = vmul.f32 %v1467_v35, %v2393_v50  ;;  %v1452_v28 = vsel %vm2409_vm8, %v1451_v18, %v1447_v36  ;;  %v1432_v39 = vsel %vm1431_vm14, %v1693_v49, %v1428_v42 }
 0x43f   :  { %v1471_v43 = vmul.f32 %v1452_v28, %v2395_v52  ;;  %v1437_v30 = vsel %vm1434_vm1, %v1436_v46, %v1432_v39  ;;  %v1417_v55 = vsel %vm1416_vm2, %v1695_v17, %v1413_v8 }
 0x440   :  { %v1476_v51 = vadd.f32 %v1472_v38, %v2354_v23  ;;  %v1470_v57 = vmul.f32 %v1437_v30, %v2397_v54  ;;  %v1422_v6 = vsel %vm1419_vm3, %v1421_v48, %v1417_v55 }
 0x441   :  { %v1475_v50 = vadd.f32 %v1471_v43, %v2358_v29  ;;  %v1469_v52 = vmul.f32 %v1422_v6, %v2399_v45 }
 0x442   :  { %1499 = vmatpush.msrb.mxu2 %v1476_v51  ;;  %v1474_v47 = vadd.f32 %v1470_v57, %v2364_v44 }
 0x443   :  { %v1473_v23 = vadd.f32 %v1469_v52, %v2368_v33 }
 0x444   :  { %1500 = vmatpush.msrb.mxu2 %v1475_v50 }
 0x446   :  { %1501 = vmatpush.msrb.mxu2 %v1474_v47 }
 0x448   :  { %1502 = vmatpush.msrb.mxu2 %v1473_v23 }
 0x449   :  { %1572 = vmatmul.msk.f32.vlgmr.msrb.gmra.mxu2 %vm202_vm0, %v1477_v61 }
 0x4cc   :  { %v1504_v29 = vpop.f32.mrf.mxu2 }
 0x4cd   :  { %v1505_v62 = vadd.f32 %v1504_v29, %v1482_v27 }
 0x4cf   :  { %1507 = vst [vmem:[%s2444_s10] sm:$0x3] %v1505_v62 }

</bundles_post_ra>
